<compile_context>
chip_gen: v5e
topology: v5e:2x2
jax: 0.10.0
libtpu: 0.0.40
codegen_flags: <defaults>
</compile_context>

<pallas_src>
import functools

import jax
import jax.numpy as jnp
from jax import lax
from jax.experimental import pallas as pl
from jax.experimental.pallas import tpu as pltpu

LN_EPS = 1e-5
LEAKY_SLOPE = 0.01
VMEM_LIMIT_BYTES = 48 * 1024 * 1024   # safe on v5e/v6e/v7x

VMEM_SPEC = pl.BlockSpec(memory_space=pltpu.MemorySpace.VMEM)


def _cparams(*dim_sem):
    return pltpu.CompilerParams(
        dimension_semantics=dim_sem if dim_sem else None,
        vmem_limit_bytes=VMEM_LIMIT_BYTES,
    )


def _tile(n, cap):
    """Largest tile <= cap that divides n and is a multiple of 8 (else n)."""
    if n <= cap:
        return n
    for t in range(cap - (cap % 8), 7, -8):
        if n % t == 0:
            return t
    return n  # TODO(synk): indivisible n falls back to a single whole-array step.


def _layernorm(x, g, b):
    mu = jnp.mean(x, axis=-1, keepdims=True)
    var = jnp.mean(jnp.square(x - mu), axis=-1, keepdims=True)
    return (x - mu) * lax.rsqrt(var + LN_EPS) * g + b


# ------------------- kernel 1: LN1 + Q + merged K|V projections --------------
def _ln_qkv_kernel(x_ref, g_ref, b_ref, wq_ref, bq_ref, wkv_ref, bkv_ref,
                   q_ref, k_ref, v_ref, *, d):
    x = x_ref[...].astype(jnp.float32)
    xn = _layernorm(x, g_ref[...], b_ref[...])
    # Q from norm1(query); softmax scale already folded into wq/bq.
    q = jnp.dot(xn.astype(jnp.bfloat16), wq_ref[...],
                preferred_element_type=jnp.float32) + bq_ref[...]
    # K / V from the *raw* query (PyTorch: attention(norm1(x), key=x, value=x)),
    # one merged (D, 2D) matmul.
    kv = jnp.dot(x.astype(jnp.bfloat16), wkv_ref[...],
                 preferred_element_type=jnp.float32) + bkv_ref[...]
    q_ref[...] = q.astype(q_ref.dtype)
    k_ref[...] = kv[:, :d].astype(k_ref.dtype)
    v_ref[...] = kv[:, d:].astype(v_ref.dtype)


def ln_qkv(x2d, p):
    n, d = x2d.shape
    tile = _tile(n, 1024)
    row = pl.BlockSpec((tile, d), lambda i: (i, 0))
    vec_d = pl.BlockSpec((1, d), lambda i: (0, 0))
    w_dd = pl.BlockSpec((d, d), lambda i: (0, 0))
    w_kv = pl.BlockSpec((d, 2 * d), lambda i: (0, 0))
    vec_2d = pl.BlockSpec((1, 2 * d), lambda i: (0, 0))
    return pl.pallas_call(
        functools.partial(_ln_qkv_kernel, d=d),
        out_shape=[jax.ShapeDtypeStruct((n, d), jnp.bfloat16)] * 3,
        grid=(n // tile,),
        in_specs=[row, vec_d, vec_d, w_dd, vec_d, w_kv, vec_2d],
        out_specs=[row, row, row],
        compiler_params=_cparams("parallel"),
    )(x2d, p["ln1_g"], p["ln1_b"], p["wq_t"], p["bq"], p["wkv_t"], p["bkv"])


# ---------------- kernel 2: flash attention (online softmax over KV) ---------
def _flash_attn_kernel(q_ref, k_ref, v_ref, o_ref, m_sc, l_sc, acc_sc):
    ki = pl.program_id(1)

    @pl.when(ki == 0)
    def _():
        m_sc[...] = jnp.full_like(m_sc, -jnp.inf)
        l_sc[...] = jnp.zeros_like(l_sc)
        acc_sc[...] = jnp.zeros_like(acc_sc)

    s = jnp.einsum("gqd,gkd->gqk", q_ref[...], k_ref[...],
                   preferred_element_type=jnp.float32)
    m_new = jnp.maximum(m_sc[...], jnp.max(s, axis=-1, keepdims=True))
    alpha = jnp.exp(m_sc[...] - m_new)
    p = jnp.exp(s - m_new)
    l_sc[...] = alpha * l_sc[...] + jnp.sum(p, axis=-1, keepdims=True)
    acc_sc[...] = alpha * acc_sc[...] + jnp.einsum(
        "gqk,gkd->gqd", p.astype(v_ref.dtype), v_ref[...],
        preferred_element_type=jnp.float32)
    m_sc[...] = m_new

    @pl.when(ki == pl.num_programs(1) - 1)
    def _():
        # exact divide (not the approximate EUP reciprocal): matches reference.
        o_ref[...] = (acc_sc[...] / l_sc[...]).astype(o_ref.dtype)


def flash_attention(qh, kh, vh):
    g, s, hd = qh.shape
    tq = _tile(s, 256)
    tk = _tile(s, 256)
    q_spec = pl.BlockSpec((g, tq, hd), lambda qi, ki: (0, qi, 0))
    kv_spec = pl.BlockSpec((g, tk, hd), lambda qi, ki: (0, ki, 0))
    return pl.pallas_call(
        _flash_attn_kernel,
        out_shape=jax.ShapeDtypeStruct((g, s, hd), qh.dtype),
        grid=(s // tq, s // tk),
        in_specs=[q_spec, kv_spec, kv_spec],
        out_specs=q_spec,
        scratch_shapes=[pltpu.VMEM((g, tq, 1), jnp.float32),
                        pltpu.VMEM((g, tq, 1), jnp.float32),
                        pltpu.VMEM((g, tq, hd), jnp.float32)],
        compiler_params=_cparams("parallel", "arbitrary"),
    )(qh, kh, vh)


# ---------------- kernel 3: output projection + residual-1 -------------------
def _out_proj_kernel(c_ref, x_ref, wo_ref, bo_ref, o_ref):
    y = jnp.dot(c_ref[...], wo_ref[...], preferred_element_type=jnp.float32)
    o_ref[...] = (y + bo_ref[...] + x_ref[...].astype(jnp.float32)
                  ).astype(o_ref.dtype)


def out_proj_residual(ctx2d, resid2d, p):
    n, d = ctx2d.shape
    tile = _tile(n, 1024)
    row = pl.BlockSpec((tile, d), lambda i: (i, 0))
    w_dd = pl.BlockSpec((d, d), lambda i: (0, 0))
    vec_d = pl.BlockSpec((1, d), lambda i: (0, 0))
    return pl.pallas_call(
        _out_proj_kernel,
        out_shape=jax.ShapeDtypeStruct((n, d), jnp.float32),
        grid=(n // tile,),
        in_specs=[row, row, w_dd, vec_d],
        out_specs=row,
        compiler_params=_cparams("parallel"),
    )(ctx2d, resid2d, p["wo_t"], p["bo"])


# ------ kernel 4: LN2 + merged GRU gate projections fused into biGRU ---------
def _ln_gru_kernel(x_ref, g2_ref, b2_ref, wih_ref, bih_ref,
                   whf_ref, bhf_ref, whb_ref, bhb_ref,
                   hf_ref, hb_ref, gf_vmem, gb_vmem):
    seq_len, bsz, _ = x_ref.shape
    hn = hf_ref.shape[2]

    g2 = g2_ref[...]
    b2 = b2_ref[...]
    wih = wih_ref[...]
    bih = bih_ref[...]

    # Phase 1: LN2 + merged fwd|bwd input-gate projection per timestep, written
    # to VMEM scratch only (the gate tensors never round-trip HBM).
    # TODO(synk): for long sequences, chunk this projection (e.g. 128 steps at a
    # time) to regain MXU M-utilization while keeping the scratch bounded.
    def gate_body(t, carry):
        xt = x_ref[t].astype(jnp.float32)                        # (B, D)
        xn = _layernorm(xt, g2, b2)
        gate = jnp.dot(xn.astype(jnp.bfloat16), wih,
                       preferred_element_type=jnp.float32) + bih  # (B, 6H)
        gf_vmem[t] = gate[:, :3 * hn]
        gb_vmem[t] = gate[:, 3 * hn:]
        return carry

    lax.fori_loop(0, seq_len, gate_body, 0)

    whf = whf_ref[...]
    bhf = bhf_ref[...]
    whb = whb_ref[...]
    bhb = bhb_ref[...]

    def gru_step(xg, h_prev, wh, bh):
        # TODO(synk): hold wh in the MXU across steps via matmul_push_rhs/acc_lhs.
        hh = jnp.dot(h_prev.astype(jnp.bfloat16), wh,
                     preferred_element_type=jnp.float32) + bh
        r = jax.nn.sigmoid(xg[:, :hn] + hh[:, :hn])
        z = jax.nn.sigmoid(xg[:, hn:2 * hn] + hh[:, hn:2 * hn])
        nw = jnp.tanh(xg[:, 2 * hn:] + r * hh[:, 2 * hn:])
        return (1.0 - z) * nw + z * h_prev

    # Phase 2: serial recurrence; fwd/bwd interleaved for ILP, backward
    # direction indexed reversed in-kernel (no [::-1] HBM passes).
    # TODO(synk): on v7x, split {fwd, bwd} across the two TensorCores via a grid.
    def rec_body(t, carry):
        hf, hb = carry
        hf = gru_step(gf_vmem[t], hf, whf, bhf)
        hf_ref[t] = hf.astype(hf_ref.dtype)
        tb = seq_len - 1 - t
        hb = gru_step(gb_vmem[tb], hb, whb, bhb)
        hb_ref[tb] = hb.astype(hb_ref.dtype)
        return hf, hb

    h0 = jnp.zeros((bsz, hn), jnp.float32)
    lax.fori_loop(0, seq_len, rec_body, (h0, h0))


def ln_gru(x1_3d, p):
    s, b, d = x1_3d.shape
    h = 2 * d
    return pl.pallas_call(
        _ln_gru_kernel,
        out_shape=[jax.ShapeDtypeStruct((s, b, h), jnp.float32)] * 2,
        in_specs=[VMEM_SPEC] * 9,
        out_specs=[VMEM_SPEC] * 2,
        scratch_shapes=[pltpu.VMEM((s, b, 3 * h), jnp.float32),
                        pltpu.VMEM((s, b, 3 * h), jnp.float32)],
        compiler_params=_cparams(),
    )(x1_3d, p["ln2_g"], p["ln2_b"], p["w_ih_t"], p["b_ih"],
      p["w_hh_f_t"], p["b_hh_f"], p["w_hh_b_t"], p["b_hh_b"])


# --------- kernel 5: leaky_relu + split Linear + residual-2 + LN3 ------------
def _ffn_out_kernel(hf_ref, hb_ref, x_ref, wa_ref, wb_ref, bl_ref,
                    g_ref, b_ref, o_ref):
    hf = hf_ref[...]
    hb = hb_ref[...]
    hf = jnp.where(hf >= 0, hf, LEAKY_SLOPE * hf)
    hb = jnp.where(hb >= 0, hb, LEAKY_SLOPE * hb)
    y = (jnp.dot(hf.astype(jnp.bfloat16), wa_ref[...],
                 preferred_element_type=jnp.float32)
         + jnp.dot(hb.astype(jnp.bfloat16), wb_ref[...],
                   preferred_element_type=jnp.float32)
         + bl_ref[...]
         + x_ref[...])                                           # residual 2
    o_ref[...] = _layernorm(y, g_ref[...], b_ref[...]).astype(o_ref.dtype)


def ffn_out(hf2d, hb2d, x1_2d, p):
    n, h = hf2d.shape
    d = x1_2d.shape[1]
    tile = _tile(n, 1024)
    row_h = pl.BlockSpec((tile, h), lambda i: (i, 0))
    row_d = pl.BlockSpec((tile, d), lambda i: (i, 0))
    w_hd = pl.BlockSpec((h, d), lambda i: (0, 0))
    vec_d = pl.BlockSpec((1, d), lambda i: (0, 0))
    return pl.pallas_call(
        _ffn_out_kernel,
        out_shape=jax.ShapeDtypeStruct((n, d), jnp.float32),
        grid=(n // tile,),
        in_specs=[row_h, row_h, row_d, w_hd, w_hd, vec_d, vec_d, vec_d],
        out_specs=row_d,
        compiler_params=_cparams("parallel"),
    )(hf2d, hb2d, x1_2d, p["w_lin_a"], p["w_lin_b"], p["b_lin"],
      p["ln3_g"], p["ln3_b"])


# ------------------------------ parameter init -------------------------------
def init_params(key, d_model, n_heads):
    h = 2 * d_model                           # GRU hidden per direction
    ks = jax.random.split(key, 15)

    def w(k, shape, scale=0.1):
        return (scale * jax.random.normal(k, shape)).astype(jnp.float32)

    bf16 = lambda a: a.astype(jnp.bfloat16)
    head_scale = 1.0 / float(d_model // n_heads) ** 0.5

    return {
        # LayerNorms (PyTorch default: gamma=1, beta=0)
        "ln1_g": jnp.ones((1, d_model), jnp.float32),
        "ln1_b": jnp.zeros((1, d_model), jnp.float32),
        "ln2_g": jnp.ones((1, d_model), jnp.float32),
        "ln2_b": jnp.zeros((1, d_model), jnp.float32),
        "ln3_g": jnp.ones((1, d_model), jnp.float32),
        "ln3_b": jnp.zeros((1, d_model), jnp.float32),
        # MHA projections, stored transposed (in, out); weights bf16, biases f32;
        # softmax scale folded into the Q projection.
        "wq_t": bf16(w(ks[0], (d_model, d_model)) * head_scale),
        "bq": w(ks[1], (1, d_model)) * head_scale,
        "wkv_t": bf16(w(ks[2], (d_model, 2 * d_model))),
        "bkv": w(ks[3], (1, 2 * d_model)),
        "wo_t": bf16(w(ks[4], (d_model, d_model))),
        "bo": w(ks[5], (1, d_model)),
        # GRU: merged fwd|bwd input weights (D, 6H); recurrent weights (H, 3H)
        # (PyTorch gate order r, z, n).
        "w_ih_t": bf16(w(ks[6], (d_model, 6 * h))),
        "b_ih": w(ks[7], (1, 6 * h)),
        "w_hh_f_t": bf16(w(ks[8], (h, 3 * h))),
        "b_hh_f": w(ks[9], (1, 3 * h)),
        "w_hh_b_t": bf16(w(ks[10], (h, 3 * h))),
        "b_hh_b": w(ks[11], (1, 3 * h)),
        # FFN Linear(2H -> D), pre-split so no h_f|h_b concat is needed.
        "w_lin_a": bf16(w(ks[12], (h, d_model))),
        "w_lin_b": bf16(w(ks[13], (h, d_model))),
        "b_lin": w(ks[14], (1, d_model)),
    }


# ------------------------------ forward (glue) --------------------------------
def transformer_block(query, params, n_heads):
    s, b, d = query.shape
    hd = d // n_heads
    g = b * n_heads
    q2 = query.reshape(s * b, d)

    # 1) LN1 + Q + merged K|V projections
    q, k, v = ln_qkv(q2, params)

    # layout plumbing (XLA): head split outside the kernel -> lane-dense (G, S, hd)
    def to_heads(t):
        return t.reshape(s, b, n_heads, hd).transpose(1, 2, 0, 3).reshape(g, s, hd)

    # 2) flash attention with online softmax over KV tiles
    ctx = flash_attention(to_heads(q), to_heads(k), to_heads(v))
    ctx2d = ctx.reshape(b, n_heads, s, hd).transpose(2, 0, 1, 3).reshape(s * b, d)

    # 3) out-projection + residual-1
    x1 = out_proj_residual(ctx2d, q2, params)

    # 4) LN2 + GRU gate projections fused into the bidirectional GRU
    h_f, h_b = ln_gru(x1.reshape(s, b, d), params)

    # 5) leaky_relu + split Linear + residual-2 + LN3
    hdim = 2 * d
    out = ffn_out(h_f.reshape(s * b, hdim), h_b.reshape(s * b, hdim), x1, params)
    return out.reshape(s, b, d)


if __name__ == "__main__":
    d_model, n_heads = 32, 4
    S, B = 8, 2

    key = jax.random.PRNGKey(0)
    k_param, k_inp = jax.random.split(key)
    params = init_params(k_param, d_model, n_heads)
    query = jax.random.normal(k_inp, (S, B, d_model), dtype=jnp.float32)

    fwd = jax.jit(functools.partial(transformer_block, n_heads=n_heads))
    out = jax.block_until_ready(fwd(query, params))

    assert out.shape == (S, B, d_model)
    assert bool(jnp.all(jnp.isfinite(out)))
    print("KERNEL_OK")
</pallas_src>

<mosaic_0001>
module attributes {stable_mosaic.version = 11 : i64} {
  func.func @_flash_attn_kernel(%arg0: i32, %arg1: i32, %arg2: memref<8x8x8xbf16, #tpu.memory_space<vmem>>, %arg3: memref<8x8x8xbf16, #tpu.memory_space<vmem>>, %arg4: memref<8x8x8xbf16, #tpu.memory_space<vmem>>, %arg5: memref<8x8x8xbf16, #tpu.memory_space<vmem>>, %arg6: memref<8x8x1xf32, #tpu.memory_space<vmem>>, %arg7: memref<8x8x1xf32, #tpu.memory_space<vmem>>, %arg8: memref<8x8x8xf32, #tpu.memory_space<vmem>>) attributes {dimension_semantics = [#tpu.dimension_semantics<parallel>, #tpu.dimension_semantics<arbitrary>], iteration_bounds = array<i64: 1, 1>, scalar_prefetch = 0 : i64, scratch_operands = 3 : i64, tpu.core_type = #tpu.core_type<tc>, window_params = [{transform_indices = @transform_0, window_bounds = array<i64: 8, 8, 8>}, {transform_indices = @transform_1, window_bounds = array<i64: 8, 8, 8>}, {transform_indices = @transform_2, window_bounds = array<i64: 8, 8, 8>}, {transform_indices = @transform_3, window_bounds = array<i64: 8, 8, 8>}]} {
    %c0_i32 = arith.constant 0 : i32
    %0 = arith.cmpi eq, %arg1, %c0_i32 : i32
    %1 = arith.extui %0 : i1 to i32
    %c0_i32_0 = arith.constant 0 : i32
    %2 = arith.cmpi ne, %1, %c0_i32_0 : i32
    scf.if %2 {
      %cst_35 = arith.constant 0xFF800000 : f32
      %34 = vector.broadcast %cst_35 : f32 to vector<8x8x1xf32>
      %c0_36 = arith.constant 0 : index
      %c0_37 = arith.constant 0 : index
      %c0_38 = arith.constant 0 : index
      %35 = vector.load %arg6[%c0_36, %c0_37, %c0_38] : memref<8x8x1xf32, #tpu.memory_space<vmem>>, vector<8x8x1xf32>
      tpu.vector_store %arg6[%c0_36, %c0_37, %c0_38], %34 {strides = array<i32>} : memref<8x8x1xf32, #tpu.memory_space<vmem>>, vector<8x8x1xf32>,
      %cst_39 = arith.constant 0.000000e+00 : f32
      %36 = vector.broadcast %cst_39 : f32 to vector<8x8x1xf32>
      %c0_40 = arith.constant 0 : index
      %c0_41 = arith.constant 0 : index
      %c0_42 = arith.constant 0 : index
      %37 = vector.load %arg7[%c0_40, %c0_41, %c0_42] : memref<8x8x1xf32, #tpu.memory_space<vmem>>, vector<8x8x1xf32>
      tpu.vector_store %arg7[%c0_40, %c0_41, %c0_42], %36 {strides = array<i32>} : memref<8x8x1xf32, #tpu.memory_space<vmem>>, vector<8x8x1xf32>,
      %cst_43 = arith.constant 0.000000e+00 : f32
      %38 = vector.broadcast %cst_43 : f32 to vector<8x8x8xf32>
      %c0_44 = arith.constant 0 : index
      %c0_45 = arith.constant 0 : index
      %c0_46 = arith.constant 0 : index
      %39 = vector.load %arg8[%c0_44, %c0_45, %c0_46] : memref<8x8x8xf32, #tpu.memory_space<vmem>>, vector<8x8x8xf32>
      tpu.vector_store %arg8[%c0_44, %c0_45, %c0_46], %38 {strides = array<i32>} : memref<8x8x8xf32, #tpu.memory_space<vmem>>, vector<8x8x8xf32>,
    } else {
    }
    %c0 = arith.constant 0 : index
    %c0_1 = arith.constant 0 : index
    %c0_2 = arith.constant 0 : index
    %3 = vector.load %arg2[%c0, %c0_1, %c0_2] : memref<8x8x8xbf16, #tpu.memory_space<vmem>>, vector<8x8x8xbf16>
    %c0_3 = arith.constant 0 : index
    %c0_4 = arith.constant 0 : index
    %c0_5 = arith.constant 0 : index
    %4 = vector.load %arg3[%c0_3, %c0_4, %c0_5] : memref<8x8x8xbf16, #tpu.memory_space<vmem>>, vector<8x8x8xbf16>
    "tpu.trace_start"() <{level = 10 : i32, message = "gqd,gkd->gqk"}> : () -> ()
    %cst = arith.constant dense<0.000000e+00> : vector<8x8x8xf32>
    %5 = tpu.matmul %3, %4, %cst {dimension_numbers = #tpu.dot_dimension_numbers<[2], [2], [1], [1], [0, 0, 0, 1, 1, 1], [0], [0]>} : vector<8x8x8xbf16>, vector<8x8x8xbf16>, vector<8x8x8xf32> -> vector<8x8x8xf32>
    "tpu.trace_stop"() : () -> ()
    %c0_6 = arith.constant 0 : index
    %c0_7 = arith.constant 0 : index
    %c0_8 = arith.constant 0 : index
    %6 = vector.load %arg6[%c0_6, %c0_7, %c0_8] : memref<8x8x1xf32, #tpu.memory_space<vmem>>, vector<8x8x1xf32>
    %cst_9 = arith.constant dense<0xFF800000> : vector<8x8xf32>
    %7 = vector.multi_reduction <maximumf>, %5, %cst_9 [2] : vector<8x8x8xf32> to vector<8x8xf32>
    %8 = vector.shape_cast %7 : vector<8x8xf32> to vector<8x8x1xf32>
    %9 = arith.maximumf %6, %8 : vector<8x8x1xf32>
    %c0_10 = arith.constant 0 : index
    %c0_11 = arith.constant 0 : index
    %c0_12 = arith.constant 0 : index
    %10 = vector.load %arg6[%c0_10, %c0_11, %c0_12] : memref<8x8x1xf32, #tpu.memory_space<vmem>>, vector<8x8x1xf32>
    %11 = arith.subf %10, %9 : vector<8x8x1xf32>
    %12 = math.exp %11 : vector<8x8x1xf32>
    %13 = vector.broadcast %9 : vector<8x8x1xf32> to vector<8x8x8xf32>
    %14 = arith.subf %5, %13 : vector<8x8x8xf32>
    %15 = math.exp %14 : vector<8x8x8xf32>
    %c0_13 = arith.constant 0 : index
    %c0_14 = arith.constant 0 : index
    %c0_15 = arith.constant 0 : index
    %16 = vector.load %arg7[%c0_13, %c0_14, %c0_15] : memref<8x8x1xf32, #tpu.memory_space<vmem>>, vector<8x8x1xf32>
    %17 = arith.mulf %12, %16 : vector<8x8x1xf32>
    %cst_16 = arith.constant dense<0.000000e+00> : vector<8x8xf32>
    %18 = vector.multi_reduction <add>, %15, %cst_16 [2] : vector<8x8x8xf32> to vector<8x8xf32>
    %19 = vector.shape_cast %18 : vector<8x8xf32> to vector<8x8x1xf32>
    %20 = arith.addf %17, %19 : vector<8x8x1xf32>
    %c0_17 = arith.constant 0 : index
    %c0_18 = arith.constant 0 : index
    %c0_19 = arith.constant 0 : index
    %21 = vector.load %arg7[%c0_17, %c0_18, %c0_19] : memref<8x8x1xf32, #tpu.memory_space<vmem>>, vector<8x8x1xf32>
    tpu.vector_store %arg7[%c0_17, %c0_18, %c0_19], %20 {strides = array<i32>} : memref<8x8x1xf32, #tpu.memory_space<vmem>>, vector<8x8x1xf32>,
    %c0_20 = arith.constant 0 : index
    %c0_21 = arith.constant 0 : index
    %c0_22 = arith.constant 0 : index
    %22 = vector.load %arg8[%c0_20, %c0_21, %c0_22] : memref<8x8x8xf32, #tpu.memory_space<vmem>>, vector<8x8x8xf32>
    %23 = vector.broadcast %12 : vector<8x8x1xf32> to vector<8x8x8xf32>
    %24 = arith.mulf %23, %22 : vector<8x8x8xf32>
    %25 = arith.truncf %15 : vector<8x8x8xf32> to vector<8x8x8xbf16>
    %c0_23 = arith.constant 0 : index
    %c0_24 = arith.constant 0 : index
    %c0_25 = arith.constant 0 : index
    %26 = vector.load %arg4[%c0_23, %c0_24, %c0_25] : memref<8x8x8xbf16, #tpu.memory_space<vmem>>, vector<8x8x8xbf16>
    "tpu.trace_start"() <{level = 10 : i32, message = "gqk,gkd->gqd"}> : () -> ()
    %cst_26 = arith.constant dense<0.000000e+00> : vector<8x8x8xf32>
    %27 = tpu.matmul %25, %26, %cst_26 {dimension_numbers = #tpu.dot_dimension_numbers<[2], [1], [1], [2], [0, 0, 0, 1, 1, 2], [0], [0]>} : vector<8x8x8xbf16>, vector<8x8x8xbf16>, vector<8x8x8xf32> -> vector<8x8x8xf32>
    "tpu.trace_stop"() : () -> ()
    %28 = arith.addf %24, %27 : vector<8x8x8xf32>
    %c0_27 = arith.constant 0 : index
    %c0_28 = arith.constant 0 : index
    %c0_29 = arith.constant 0 : index
    %29 = vector.load %arg8[%c0_27, %c0_28, %c0_29] : memref<8x8x8xf32, #tpu.memory_space<vmem>>, vector<8x8x8xf32>
    tpu.vector_store %arg8[%c0_27, %c0_28, %c0_29], %28 {strides = array<i32>} : memref<8x8x8xf32, #tpu.memory_space<vmem>>, vector<8x8x8xf32>,
    %c0_30 = arith.constant 0 : index
    %c0_31 = arith.constant 0 : index
    %c0_32 = arith.constant 0 : index
    %30 = vector.load %arg6[%c0_30, %c0_31, %c0_32] : memref<8x8x1xf32, #tpu.memory_space<vmem>>, vector<8x8x1xf32>
    tpu.vector_store %arg6[%c0_30, %c0_31, %c0_32], %9 {strides = array<i32>} : memref<8x8x1xf32, #tpu.memory_space<vmem>>, vector<8x8x1xf32>,
    %c0_i32_33 = arith.constant 0 : i32
    %31 = arith.cmpi eq, %arg1, %c0_i32_33 : i32
    %32 = arith.extui %31 : i1 to i32
    %c0_i32_34 = arith.constant 0 : i32
    %33 = arith.cmpi ne, %32, %c0_i32_34 : i32
    scf.if %33 {
      %c0_35 = arith.constant 0 : index
      %c0_36 = arith.constant 0 : index
      %c0_37 = arith.constant 0 : index
      %34 = vector.load %arg8[%c0_35, %c0_36, %c0_37] : memref<8x8x8xf32, #tpu.memory_space<vmem>>, vector<8x8x8xf32>
      %c0_38 = arith.constant 0 : index
      %c0_39 = arith.constant 0 : index
      %c0_40 = arith.constant 0 : index
      %35 = vector.load %arg7[%c0_38, %c0_39, %c0_40] : memref<8x8x1xf32, #tpu.memory_space<vmem>>, vector<8x8x1xf32>
      %36 = vector.broadcast %35 : vector<8x8x1xf32> to vector<8x8x8xf32>
      %37 = arith.divf %34, %36 : vector<8x8x8xf32>
      %38 = arith.truncf %37 : vector<8x8x8xf32> to vector<8x8x8xbf16>
      %c0_41 = arith.constant 0 : index
      %c0_42 = arith.constant 0 : index
      %c0_43 = arith.constant 0 : index
      %39 = vector.load %arg5[%c0_41, %c0_42, %c0_43] : memref<8x8x8xbf16, #tpu.memory_space<vmem>>, vector<8x8x8xbf16>
      tpu.vector_store %arg5[%c0_41, %c0_42, %c0_43], %38 {strides = array<i32>} : memref<8x8x8xbf16, #tpu.memory_space<vmem>>, vector<8x8x8xbf16>,
    } else {
    }
    return
  }
  func.func @transform_0(%arg0: i32, %arg1: i32) -> (i32, i32, i32) {
    %c0_i32 = arith.constant 0 : i32
    %c0_i32_0 = arith.constant 0 : i32
    %c0_i32_1 = arith.constant 0 : i32
    return %c0_i32, %arg0, %c0_i32_0 : i32, i32, i32
  }
  func.func @transform_1(%arg0: i32, %arg1: i32) -> (i32, i32, i32) {
    %c0_i32 = arith.constant 0 : i32
    %c0_i32_0 = arith.constant 0 : i32
    %c0_i32_1 = arith.constant 0 : i32
    return %c0_i32, %arg1, %c0_i32_0 : i32, i32, i32
  }
  func.func @transform_2(%arg0: i32, %arg1: i32) -> (i32, i32, i32) {
    %c0_i32 = arith.constant 0 : i32
    %c0_i32_0 = arith.constant 0 : i32
    %c0_i32_1 = arith.constant 0 : i32
    return %c0_i32, %arg1, %c0_i32_0 : i32, i32, i32
  }
  func.func @transform_3(%arg0: i32, %arg1: i32) -> (i32, i32, i32) {
    %c0_i32 = arith.constant 0 : i32
    %c0_i32_0 = arith.constant 0 : i32
    %c0_i32_1 = arith.constant 0 : i32
    return %c0_i32, %arg0, %c0_i32_0 : i32, i32, i32
  }
}

module attributes {stable_mosaic.version = 11 : i64} {
  func.func @_ln_qkv_kernel(%arg0: i32, %arg1: memref<16x32xf32, #tpu.memory_space<vmem>>, %arg2: memref<1x32xf32, #tpu.memory_space<vmem>>, %arg3: memref<1x32xf32, #tpu.memory_space<vmem>>, %arg4: memref<32x32xbf16, #tpu.memory_space<vmem>>, %arg5: memref<1x32xf32, #tpu.memory_space<vmem>>, %arg6: memref<32x64xbf16, #tpu.memory_space<vmem>>, %arg7: memref<1x64xf32, #tpu.memory_space<vmem>>, %arg8: memref<16x32xbf16, #tpu.memory_space<vmem>>, %arg9: memref<16x32xbf16, #tpu.memory_space<vmem>>, %arg10: memref<16x32xbf16, #tpu.memory_space<vmem>>) attributes {dimension_semantics = [#tpu.dimension_semantics<parallel>], iteration_bounds = array<i64: 1>, scalar_prefetch = 0 : i64, scratch_operands = 0 : i64, tpu.core_type = #tpu.core_type<tc>, window_params = [{transform_indices = @transform_0, window_bounds = array<i64: 16, 32>}, {pipeline_mode = #tpu.pipeline_mode<synchronous>, transform_indices = @transform_1, window_bounds = array<i64: 1, 32>}, {pipeline_mode = #tpu.pipeline_mode<synchronous>, transform_indices = @transform_2, window_bounds = array<i64: 1, 32>}, {pipeline_mode = #tpu.pipeline_mode<synchronous>, transform_indices = @transform_3, window_bounds = array<i64: 32, 32>}, {pipeline_mode = #tpu.pipeline_mode<synchronous>, transform_indices = @transform_4, window_bounds = array<i64: 1, 32>}, {pipeline_mode = #tpu.pipeline_mode<synchronous>, transform_indices = @transform_5, window_bounds = array<i64: 32, 64>}, {pipeline_mode = #tpu.pipeline_mode<synchronous>, transform_indices = @transform_6, window_bounds = array<i64: 1, 64>}, {transform_indices = @transform_7, window_bounds = array<i64: 16, 32>}, {transform_indices = @transform_8, window_bounds = array<i64: 16, 32>}, {transform_indices = @transform_9, window_bounds = array<i64: 16, 32>}]} {
    %c0 = arith.constant 0 : index
    %c0_0 = arith.constant 0 : index
    %0 = vector.load %arg1[%c0, %c0_0] : memref<16x32xf32, #tpu.memory_space<vmem>>, vector<16x32xf32>
    %c0_1 = arith.constant 0 : index
    %c0_2 = arith.constant 0 : index
    %1 = vector.load %arg2[%c0_1, %c0_2] : memref<1x32xf32, #tpu.memory_space<vmem>>, vector<1x32xf32>
    %c0_3 = arith.constant 0 : index
    %c0_4 = arith.constant 0 : index
    %2 = vector.load %arg3[%c0_3, %c0_4] : memref<1x32xf32, #tpu.memory_space<vmem>>, vector<1x32xf32>
    %cst = arith.constant dense<0.000000e+00> : vector<16xf32>
    %3 = vector.multi_reduction <add>, %0, %cst [1] : vector<16x32xf32> to vector<16xf32>
    %4 = vector.shape_cast %3 : vector<16xf32> to vector<16x1xf32>
    %cst_5 = arith.constant 3.200000e+01 : f32
    %5 = vector.broadcast %cst_5 : f32 to vector<16x1xf32>
    %6 = arith.divf %4, %5 : vector<16x1xf32>
    %7 = vector.broadcast %6 : vector<16x1xf32> to vector<16x32xf32>
    %8 = arith.subf %0, %7 : vector<16x32xf32>
    %9 = arith.mulf %8, %8 : vector<16x32xf32>
    %cst_6 = arith.constant dense<0.000000e+00> : vector<16xf32>
    %10 = vector.multi_reduction <add>, %9, %cst_6 [1] : vector<16x32xf32> to vector<16xf32>
    %11 = vector.shape_cast %10 : vector<16xf32> to vector<16x1xf32>
    %cst_7 = arith.constant 3.200000e+01 : f32
    %12 = vector.broadcast %cst_7 : f32 to vector<16x1xf32>
    %13 = arith.divf %11, %12 : vector<16x1xf32>
    %14 = vector.broadcast %6 : vector<16x1xf32> to vector<16x32xf32>
    %15 = arith.subf %0, %14 : vector<16x32xf32>
    %cst_8 = arith.constant 9.99999974E-6 : f32
    %16 = vector.broadcast %cst_8 : f32 to vector<16x1xf32>
    %17 = arith.addf %13, %16 : vector<16x1xf32>
    %18 = math.rsqrt %17 : vector<16x1xf32>
    %19 = vector.broadcast %18 : vector<16x1xf32> to vector<16x32xf32>
    %20 = arith.mulf %15, %19 : vector<16x32xf32>
    %21 = vector.broadcast %1 : vector<1x32xf32> to vector<16x32xf32>
    %22 = arith.mulf %20, %21 : vector<16x32xf32>
    %23 = vector.broadcast %2 : vector<1x32xf32> to vector<16x32xf32>
    %24 = arith.addf %22, %23 : vector<16x32xf32>
    %25 = arith.truncf %24 : vector<16x32xf32> to vector<16x32xbf16>
    %c0_9 = arith.constant 0 : index
    %c0_10 = arith.constant 0 : index
    %26 = vector.load %arg4[%c0_9, %c0_10] : memref<32x32xbf16, #tpu.memory_space<vmem>>, vector<32x32xbf16>
    %cst_11 = arith.constant dense<0.000000e+00> : vector<16x32xf32>
    %27 = tpu.matmul %25, %26, %cst_11 {dimension_numbers = #tpu.dot_dimension_numbers<[1], [0], [0], [1], [0, 0, 1, 1], [], []>} : vector<16x32xbf16>, vector<32x32xbf16>, vector<16x32xf32> -> vector<16x32xf32>
    %c0_12 = arith.constant 0 : index
    %c0_13 = arith.constant 0 : index
    %28 = vector.load %arg5[%c0_12, %c0_13] : memref<1x32xf32, #tpu.memory_space<vmem>>, vector<1x32xf32>
    %29 = vector.broadcast %28 : vector<1x32xf32> to vector<16x32xf32>
    %30 = arith.addf %27, %29 : vector<16x32xf32>
    %31 = arith.truncf %0 : vector<16x32xf32> to vector<16x32xbf16>
    %c0_14 = arith.constant 0 : index
    %c0_15 = arith.constant 0 : index
    %32 = vector.load %arg6[%c0_14, %c0_15] : memref<32x64xbf16, #tpu.memory_space<vmem>>, vector<32x64xbf16>
    %cst_16 = arith.constant dense<0.000000e+00> : vector<16x64xf32>
    %33 = tpu.matmul %31, %32, %cst_16 {dimension_numbers = #tpu.dot_dimension_numbers<[1], [0], [0], [1], [0, 0, 1, 1], [], []>} : vector<16x32xbf16>, vector<32x64xbf16>, vector<16x64xf32> -> vector<16x64xf32>
    %c0_17 = arith.constant 0 : index
    %c0_18 = arith.constant 0 : index
    %34 = vector.load %arg7[%c0_17, %c0_18] : memref<1x64xf32, #tpu.memory_space<vmem>>, vector<1x64xf32>
    %35 = vector.broadcast %34 : vector<1x64xf32> to vector<16x64xf32>
    %36 = arith.addf %33, %35 : vector<16x64xf32>
    %37 = arith.truncf %30 : vector<16x32xf32> to vector<16x32xbf16>
    %c0_19 = arith.constant 0 : index
    %c0_20 = arith.constant 0 : index
    %38 = vector.load %arg8[%c0_19, %c0_20] : memref<16x32xbf16, #tpu.memory_space<vmem>>, vector<16x32xbf16>
    tpu.vector_store %arg8[%c0_19, %c0_20], %37 {strides = array<i32>} : memref<16x32xbf16, #tpu.memory_space<vmem>>, vector<16x32xbf16>,
    %39 = vector.extract_strided_slice %36 {offsets = [0, 0], sizes = [16, 32], strides = [1, 1]} : vector<16x64xf32> to vector<16x32xf32>
    %40 = arith.truncf %39 : vector<16x32xf32> to vector<16x32xbf16>
    %c0_21 = arith.constant 0 : index
    %c0_22 = arith.constant 0 : index
    %41 = vector.load %arg9[%c0_21, %c0_22] : memref<16x32xbf16, #tpu.memory_space<vmem>>, vector<16x32xbf16>
    tpu.vector_store %arg9[%c0_21, %c0_22], %40 {strides = array<i32>} : memref<16x32xbf16, #tpu.memory_space<vmem>>, vector<16x32xbf16>,
    %42 = vector.extract_strided_slice %36 {offsets = [0, 32], sizes = [16, 32], strides = [1, 1]} : vector<16x64xf32> to vector<16x32xf32>
    %43 = arith.truncf %42 : vector<16x32xf32> to vector<16x32xbf16>
    %c0_23 = arith.constant 0 : index
    %c0_24 = arith.constant 0 : index
    %44 = vector.load %arg10[%c0_23, %c0_24] : memref<16x32xbf16, #tpu.memory_space<vmem>>, vector<16x32xbf16>
    tpu.vector_store %arg10[%c0_23, %c0_24], %43 {strides = array<i32>} : memref<16x32xbf16, #tpu.memory_space<vmem>>, vector<16x32xbf16>,
    return
  }
  func.func @transform_0(%arg0: i32) -> (i32, i32) {
    %c0_i32 = arith.constant 0 : i32
    %c0_i32_0 = arith.constant 0 : i32
    return %arg0, %c0_i32 : i32, i32
  }
  func.func @transform_1(%arg0: i32) -> (i32, i32) {
    %c0_i32 = arith.constant 0 : i32
    %c0_i32_0 = arith.constant 0 : i32
    %c0_i32_1 = arith.constant 0 : i32
    return %c0_i32, %c0_i32_0 : i32, i32
  }
  func.func @transform_2(%arg0: i32) -> (i32, i32) {
    %c0_i32 = arith.constant 0 : i32
    %c0_i32_0 = arith.constant 0 : i32
    %c0_i32_1 = arith.constant 0 : i32
    return %c0_i32, %c0_i32_0 : i32, i32
  }
  func.func @transform_3(%arg0: i32) -> (i32, i32) {
    %c0_i32 = arith.constant 0 : i32
    %c0_i32_0 = arith.constant 0 : i32
    %c0_i32_1 = arith.constant 0 : i32
    return %c0_i32, %c0_i32_0 : i32, i32
  }
  func.func @transform_4(%arg0: i32) -> (i32, i32) {
    %c0_i32 = arith.constant 0 : i32
    %c0_i32_0 = arith.constant 0 : i32
    %c0_i32_1 = arith.constant 0 : i32
    return %c0_i32, %c0_i32_0 : i32, i32
  }
  func.func @transform_5(%arg0: i32) -> (i32, i32) {
    %c0_i32 = arith.constant 0 : i32
    %c0_i32_0 = arith.constant 0 : i32
    %c0_i32_1 = arith.constant 0 : i32
    return %c0_i32, %c0_i32_0 : i32, i32
  }
  func.func @transform_6(%arg0: i32) -> (i32, i32) {
    %c0_i32 = arith.constant 0 : i32
    %c0_i32_0 = arith.constant 0 : i32
    %c0_i32_1 = arith.constant 0 : i32
    return %c0_i32, %c0_i32_0 : i32, i32
  }
  func.func @transform_7(%arg0: i32) -> (i32, i32) {
    %c0_i32 = arith.constant 0 : i32
    %c0_i32_0 = arith.constant 0 : i32
    return %arg0, %c0_i32 : i32, i32
  }
  func.func @transform_8(%arg0: i32) -> (i32, i32) {
    %c0_i32 = arith.constant 0 : i32
    %c0_i32_0 = arith.constant 0 : i32
    return %arg0, %c0_i32 : i32, i32
  }
  func.func @transform_9(%arg0: i32) -> (i32, i32) {
    %c0_i32 = arith.constant 0 : i32
    %c0_i32_0 = arith.constant 0 : i32
    return %arg0, %c0_i32 : i32, i32
  }
}

module attributes {stable_mosaic.version = 11 : i64} {
  func.func @_out_proj_kernel(%arg0: i32, %arg1: memref<16x32xbf16, #tpu.memory_space<vmem>>, %arg2: memref<16x32xf32, #tpu.memory_space<vmem>>, %arg3: memref<32x32xbf16, #tpu.memory_space<vmem>>, %arg4: memref<1x32xf32, #tpu.memory_space<vmem>>, %arg5: memref<16x32xf32, #tpu.memory_space<vmem>>) attributes {dimension_semantics = [#tpu.dimension_semantics<parallel>], iteration_bounds = array<i64: 1>, scalar_prefetch = 0 : i64, scratch_operands = 0 : i64, tpu.core_type = #tpu.core_type<tc>, window_params = [{transform_indices = @transform_0, window_bounds = array<i64: 16, 32>}, {transform_indices = @transform_1, window_bounds = array<i64: 16, 32>}, {pipeline_mode = #tpu.pipeline_mode<synchronous>, transform_indices = @transform_2, window_bounds = array<i64: 32, 32>}, {pipeline_mode = #tpu.pipeline_mode<synchronous>, transform_indices = @transform_3, window_bounds = array<i64: 1, 32>}, {transform_indices = @transform_4, window_bounds = array<i64: 16, 32>}]} {
    %c0 = arith.constant 0 : index
    %c0_0 = arith.constant 0 : index
    %0 = vector.load %arg1[%c0, %c0_0] : memref<16x32xbf16, #tpu.memory_space<vmem>>, vector<16x32xbf16>
    %c0_1 = arith.constant 0 : index
    %c0_2 = arith.constant 0 : index
    %1 = vector.load %arg3[%c0_1, %c0_2] : memref<32x32xbf16, #tpu.memory_space<vmem>>, vector<32x32xbf16>
    %cst = arith.constant dense<0.000000e+00> : vector<16x32xf32>
    %2 = tpu.matmul %0, %1, %cst {dimension_numbers = #tpu.dot_dimension_numbers<[1], [0], [0], [1], [0, 0, 1, 1], [], []>} : vector<16x32xbf16>, vector<32x32xbf16>, vector<16x32xf32> -> vector<16x32xf32>
    %c0_3 = arith.constant 0 : index
    %c0_4 = arith.constant 0 : index
    %3 = vector.load %arg4[%c0_3, %c0_4] : memref<1x32xf32, #tpu.memory_space<vmem>>, vector<1x32xf32>
    %4 = vector.broadcast %3 : vector<1x32xf32> to vector<16x32xf32>
    %5 = arith.addf %2, %4 : vector<16x32xf32>
    %c0_5 = arith.constant 0 : index
    %c0_6 = arith.constant 0 : index
    %6 = vector.load %arg2[%c0_5, %c0_6] : memref<16x32xf32, #tpu.memory_space<vmem>>, vector<16x32xf32>
    %7 = arith.addf %5, %6 : vector<16x32xf32>
    %c0_7 = arith.constant 0 : index
    %c0_8 = arith.constant 0 : index
    %8 = vector.load %arg5[%c0_7, %c0_8] : memref<16x32xf32, #tpu.memory_space<vmem>>, vector<16x32xf32>
    tpu.vector_store %arg5[%c0_7, %c0_8], %7 {strides = array<i32>} : memref<16x32xf32, #tpu.memory_space<vmem>>, vector<16x32xf32>,
    return
  }
  func.func @transform_0(%arg0: i32) -> (i32, i32) {
    %c0_i32 = arith.constant 0 : i32
    %c0_i32_0 = arith.constant 0 : i32
    return %arg0, %c0_i32 : i32, i32
  }
  func.func @transform_1(%arg0: i32) -> (i32, i32) {
    %c0_i32 = arith.constant 0 : i32
    %c0_i32_0 = arith.constant 0 : i32
    return %arg0, %c0_i32 : i32, i32
  }
  func.func @transform_2(%arg0: i32) -> (i32, i32) {
    %c0_i32 = arith.constant 0 : i32
    %c0_i32_0 = arith.constant 0 : i32
    %c0_i32_1 = arith.constant 0 : i32
    return %c0_i32, %c0_i32_0 : i32, i32
  }
  func.func @transform_3(%arg0: i32) -> (i32, i32) {
    %c0_i32 = arith.constant 0 : i32
    %c0_i32_0 = arith.constant 0 : i32
    %c0_i32_1 = arith.constant 0 : i32
    return %c0_i32, %c0_i32_0 : i32, i32
  }
  func.func @transform_4(%arg0: i32) -> (i32, i32) {
    %c0_i32 = arith.constant 0 : i32
    %c0_i32_0 = arith.constant 0 : i32
    return %arg0, %c0_i32 : i32, i32
  }
}

module attributes {stable_mosaic.version = 11 : i64} {
  func.func @_ln_gru_kernel(%arg0: memref<8x2x32xf32, #tpu.memory_space<vmem>>, %arg1: memref<1x32xf32, #tpu.memory_space<vmem>>, %arg2: memref<1x32xf32, #tpu.memory_space<vmem>>, %arg3: memref<32x384xbf16, #tpu.memory_space<vmem>>, %arg4: memref<1x384xf32, #tpu.memory_space<vmem>>, %arg5: memref<64x192xbf16, #tpu.memory_space<vmem>>, %arg6: memref<1x192xf32, #tpu.memory_space<vmem>>, %arg7: memref<64x192xbf16, #tpu.memory_space<vmem>>, %arg8: memref<1x192xf32, #tpu.memory_space<vmem>>, %arg9: memref<8x2x64xf32, #tpu.memory_space<vmem>>, %arg10: memref<8x2x64xf32, #tpu.memory_space<vmem>>, %arg11: memref<8x2x192xf32, #tpu.memory_space<vmem>>, %arg12: memref<8x2x192xf32, #tpu.memory_space<vmem>>) attributes {dimension_semantics = [], scalar_prefetch = 0 : i64, scratch_operands = 2 : i64, tpu.core_type = #tpu.core_type<tc>} {
    %c0 = arith.constant 0 : index
    %c0_0 = arith.constant 0 : index
    %0 = vector.load %arg1[%c0, %c0_0] : memref<1x32xf32, #tpu.memory_space<vmem>>, vector<1x32xf32>
    %c0_1 = arith.constant 0 : index
    %c0_2 = arith.constant 0 : index
    %1 = vector.load %arg2[%c0_1, %c0_2] : memref<1x32xf32, #tpu.memory_space<vmem>>, vector<1x32xf32>
    %c0_3 = arith.constant 0 : index
    %c0_4 = arith.constant 0 : index
    %2 = vector.load %arg3[%c0_3, %c0_4] : memref<32x384xbf16, #tpu.memory_space<vmem>>, vector<32x384xbf16>
    %c0_5 = arith.constant 0 : index
    %c0_6 = arith.constant 0 : index
    %3 = vector.load %arg4[%c0_5, %c0_6] : memref<1x384xf32, #tpu.memory_space<vmem>>, vector<1x384xf32>
    %c0_i32 = arith.constant 0 : i32
    %c8_i32 = arith.constant 8 : i32
    %4 = arith.addi %c0_i32, %c8_i32 : i32
    %c1_i32 = arith.constant 1 : i32
    scf.for %arg13 = %c0_i32 to %4 step %c1_i32  : i32 {
      %12 = arith.index_cast %arg13 : i32 to index
      %c0_20 = arith.constant 0 : index
      %c0_21 = arith.constant 0 : index
      %13 = vector.load %arg0[%12, %c0_20, %c0_21] : memref<8x2x32xf32, #tpu.memory_space<vmem>>, vector<1x2x32xf32>
      %14 = vector.shape_cast %13 : vector<1x2x32xf32> to vector<2x32xf32>
      %cst_22 = arith.constant dense<0.000000e+00> : vector<2xf32>
      %15 = vector.multi_reduction <add>, %14, %cst_22 [1] : vector<2x32xf32> to vector<2xf32>
      %16 = vector.shape_cast %15 : vector<2xf32> to vector<2x1xf32>
      %cst_23 = arith.constant 3.200000e+01 : f32
      %17 = vector.broadcast %cst_23 : f32 to vector<2x1xf32>
      %18 = arith.divf %16, %17 : vector<2x1xf32>
      %19 = vector.broadcast %18 : vector<2x1xf32> to vector<2x32xf32>
      %20 = arith.subf %14, %19 : vector<2x32xf32>
      %21 = arith.mulf %20, %20 : vector<2x32xf32>
      %cst_24 = arith.constant dense<0.000000e+00> : vector<2xf32>
      %22 = vector.multi_reduction <add>, %21, %cst_24 [1] : vector<2x32xf32> to vector<2xf32>
      %23 = vector.shape_cast %22 : vector<2xf32> to vector<2x1xf32>
      %cst_25 = arith.constant 3.200000e+01 : f32
      %24 = vector.broadcast %cst_25 : f32 to vector<2x1xf32>
      %25 = arith.divf %23, %24 : vector<2x1xf32>
      %26 = vector.broadcast %18 : vector<2x1xf32> to vector<2x32xf32>
      %27 = arith.subf %14, %26 : vector<2x32xf32>
      %cst_26 = arith.constant 9.99999974E-6 : f32
      %28 = vector.broadcast %cst_26 : f32 to vector<2x1xf32>
      %29 = arith.addf %25, %28 : vector<2x1xf32>
      %30 = math.rsqrt %29 : vector<2x1xf32>
      %31 = vector.broadcast %30 : vector<2x1xf32> to vector<2x32xf32>
      %32 = arith.mulf %27, %31 : vector<2x32xf32>
      %33 = vector.broadcast %0 : vector<1x32xf32> to vector<2x32xf32>
      %34 = arith.mulf %32, %33 : vector<2x32xf32>
      %35 = vector.broadcast %1 : vector<1x32xf32> to vector<2x32xf32>
      %36 = arith.addf %34, %35 : vector<2x32xf32>
      %37 = arith.truncf %36 : vector<2x32xf32> to vector<2x32xbf16>
      %cst_27 = arith.constant dense<0.000000e+00> : vector<2x384xf32>
      %38 = tpu.matmul %37, %2, %cst_27 {dimension_numbers = #tpu.dot_dimension_numbers<[1], [0], [0], [1], [0, 0, 1, 1], [], []>} : vector<2x32xbf16>, vector<32x384xbf16>, vector<2x384xf32> -> vector<2x384xf32>
      %39 = vector.broadcast %3 : vector<1x384xf32> to vector<2x384xf32>
      %40 = arith.addf %38, %39 : vector<2x384xf32>
      %41 = vector.extract_strided_slice %40 {offsets = [0, 0], sizes = [2, 192], strides = [1, 1]} : vector<2x384xf32> to vector<2x192xf32>
      %42 = arith.index_cast %arg13 : i32 to index
      %c0_28 = arith.constant 0 : index
      %c0_29 = arith.constant 0 : index
      %43 = vector.load %arg11[%42, %c0_28, %c0_29] : memref<8x2x192xf32, #tpu.memory_space<vmem>>, vector<1x2x192xf32>
      %44 = vector.shape_cast %43 : vector<1x2x192xf32> to vector<2x192xf32>
      %45 = vector.shape_cast %41 : vector<2x192xf32> to vector<1x2x192xf32>
      tpu.vector_store %arg11[%42, %c0_28, %c0_29], %45 {strides = array<i32>} : memref<8x2x192xf32, #tpu.memory_space<vmem>>, vector<1x2x192xf32>,
      %46 = vector.extract_strided_slice %40 {offsets = [0, 192], sizes = [2, 192], strides = [1, 1]} : vector<2x384xf32> to vector<2x192xf32>
      %47 = arith.index_cast %arg13 : i32 to index
      %c0_30 = arith.constant 0 : index
      %c0_31 = arith.constant 0 : index
      %48 = vector.load %arg12[%47, %c0_30, %c0_31] : memref<8x2x192xf32, #tpu.memory_space<vmem>>, vector<1x2x192xf32>
      %49 = vector.shape_cast %48 : vector<1x2x192xf32> to vector<2x192xf32>
      %50 = vector.shape_cast %46 : vector<2x192xf32> to vector<1x2x192xf32>
      tpu.vector_store %arg12[%47, %c0_30, %c0_31], %50 {strides = array<i32>} : memref<8x2x192xf32, #tpu.memory_space<vmem>>, vector<1x2x192xf32>,
    }
    %c8_i32_7 = arith.constant 8 : i32
    %c0_8 = arith.constant 0 : index
    %c0_9 = arith.constant 0 : index
    %5 = vector.load %arg5[%c0_8, %c0_9] : memref<64x192xbf16, #tpu.memory_space<vmem>>, vector<64x192xbf16>
    %c0_10 = arith.constant 0 : index
    %c0_11 = arith.constant 0 : index
    %6 = vector.load %arg6[%c0_10, %c0_11] : memref<1x192xf32, #tpu.memory_space<vmem>>, vector<1x192xf32>
    %c0_12 = arith.constant 0 : index
    %c0_13 = arith.constant 0 : index
    %7 = vector.load %arg7[%c0_12, %c0_13] : memref<64x192xbf16, #tpu.memory_space<vmem>>, vector<64x192xbf16>
    %c0_14 = arith.constant 0 : index
    %c0_15 = arith.constant 0 : index
    %8 = vector.load %arg8[%c0_14, %c0_15] : memref<1x192xf32, #tpu.memory_space<vmem>>, vector<1x192xf32>
    %cst = arith.constant 0.000000e+00 : f32
    %9 = vector.broadcast %cst : f32 to vector<2x64xf32>
    %c0_i32_16 = arith.constant 0 : i32
    %c8_i32_17 = arith.constant 8 : i32
    %10 = arith.addi %c0_i32_16, %c8_i32_17 : i32
    %c1_i32_18 = arith.constant 1 : i32
    %11:2 = scf.for %arg13 = %c0_i32_16 to %10 step %c1_i32_18 iter_args(%arg14 = %9, %arg15 = %9) -> (vector<2x64xf32>, vector<2x64xf32>)  : i32 {
      %12 = arith.index_cast %arg13 : i32 to index
      %c0_20 = arith.constant 0 : index
      %c0_21 = arith.constant 0 : index
      %13 = vector.load %arg11[%12, %c0_20, %c0_21] : memref<8x2x192xf32, #tpu.memory_space<vmem>>, vector<1x2x192xf32>
      %14 = vector.shape_cast %13 : vector<1x2x192xf32> to vector<2x192xf32>
      %15 = arith.truncf %arg14 : vector<2x64xf32> to vector<2x64xbf16>
      %cst_22 = arith.constant dense<0.000000e+00> : vector<2x192xf32>
      %16 = tpu.matmul %15, %5, %cst_22 {dimension_numbers = #tpu.dot_dimension_numbers<[1], [0], [0], [1], [0, 0, 1, 1], [], []>} : vector<2x64xbf16>, vector<64x192xbf16>, vector<2x192xf32> -> vector<2x192xf32>
      %17 = vector.broadcast %6 : vector<1x192xf32> to vector<2x192xf32>
      %18 = arith.addf %16, %17 : vector<2x192xf32>
      %19 = vector.extract_strided_slice %14 {offsets = [0, 0], sizes = [2, 64], strides = [1, 1]} : vector<2x192xf32> to vector<2x64xf32>
      %20 = vector.extract_strided_slice %18 {offsets = [0, 0], sizes = [2, 64], strides = [1, 1]} : vector<2x192xf32> to vector<2x64xf32>
      %21 = arith.addf %19, %20 : vector<2x64xf32>
      %22 = arith.negf %21 : vector<2x64xf32>
      %23 = math.exp %22 : vector<2x64xf32>
      %cst_23 = arith.constant 1.000000e+00 : f32
      %24 = vector.broadcast %cst_23 : f32 to vector<2x64xf32>
      %25 = arith.addf %24, %23 : vector<2x64xf32>
      %26 = arith.divf %24, %25 : vector<2x64xf32>
      %27 = vector.extract_strided_slice %14 {offsets = [0, 64], sizes = [2, 64], strides = [1, 1]} : vector<2x192xf32> to vector<2x64xf32>
      %28 = vector.extract_strided_slice %18 {offsets = [0, 64], sizes = [2, 64], strides = [1, 1]} : vector<2x192xf32> to vector<2x64xf32>
      %29 = arith.addf %27, %28 : vector<2x64xf32>
      %30 = arith.negf %29 : vector<2x64xf32>
      %31 = math.exp %30 : vector<2x64xf32>
      %cst_24 = arith.constant 1.000000e+00 : f32
      %32 = vector.broadcast %cst_24 : f32 to vector<2x64xf32>
      %33 = arith.addf %32, %31 : vector<2x64xf32>
      %34 = arith.divf %32, %33 : vector<2x64xf32>
      %35 = vector.extract_strided_slice %14 {offsets = [0, 128], sizes = [2, 64], strides = [1, 1]} : vector<2x192xf32> to vector<2x64xf32>
      %36 = vector.extract_strided_slice %18 {offsets = [0, 128], sizes = [2, 64], strides = [1, 1]} : vector<2x192xf32> to vector<2x64xf32>
      %37 = arith.mulf %26, %36 : vector<2x64xf32>
      %38 = arith.addf %35, %37 : vector<2x64xf32>
      %39 = math.tanh %38 : vector<2x64xf32>
      %cst_25 = arith.constant 1.000000e+00 : f32
      %40 = vector.broadcast %cst_25 : f32 to vector<2x64xf32>
      %41 = arith.subf %40, %34 : vector<2x64xf32>
      %42 = arith.mulf %41, %39 : vector<2x64xf32>
      %43 = arith.mulf %34, %arg14 : vector<2x64xf32>
      %44 = arith.addf %42, %43 : vector<2x64xf32>
      %45 = arith.index_cast %arg13 : i32 to index
      %c0_26 = arith.constant 0 : index
      %c0_27 = arith.constant 0 : index
      %46 = vector.load %arg9[%45, %c0_26, %c0_27] : memref<8x2x64xf32, #tpu.memory_space<vmem>>, vector<1x2x64xf32>
      %47 = vector.shape_cast %46 : vector<1x2x64xf32> to vector<2x64xf32>
      %48 = vector.shape_cast %44 : vector<2x64xf32> to vector<1x2x64xf32>
      tpu.vector_store %arg9[%45, %c0_26, %c0_27], %48 {strides = array<i32>} : memref<8x2x64xf32, #tpu.memory_space<vmem>>, vector<1x2x64xf32>,
      %c7_i32 = arith.constant 7 : i32
      %49 = arith.subi %c7_i32, %arg13 : i32
      %50 = arith.index_cast %49 : i32 to index
      %c0_28 = arith.constant 0 : index
      %c0_29 = arith.constant 0 : index
      %51 = vector.load %arg12[%50, %c0_28, %c0_29] : memref<8x2x192xf32, #tpu.memory_space<vmem>>, vector<1x2x192xf32>
      %52 = vector.shape_cast %51 : vector<1x2x192xf32> to vector<2x192xf32>
      %53 = arith.truncf %arg15 : vector<2x64xf32> to vector<2x64xbf16>
      %cst_30 = arith.constant dense<0.000000e+00> : vector<2x192xf32>
      %54 = tpu.matmul %53, %7, %cst_30 {dimension_numbers = #tpu.dot_dimension_numbers<[1], [0], [0], [1], [0, 0, 1, 1], [], []>} : vector<2x64xbf16>, vector<64x192xbf16>, vector<2x192xf32> -> vector<2x192xf32>
      %55 = vector.broadcast %8 : vector<1x192xf32> to vector<2x192xf32>
      %56 = arith.addf %54, %55 : vector<2x192xf32>
      %57 = vector.extract_strided_slice %52 {offsets = [0, 0], sizes = [2, 64], strides = [1, 1]} : vector<2x192xf32> to vector<2x64xf32>
      %58 = vector.extract_strided_slice %56 {offsets = [0, 0], sizes = [2, 64], strides = [1, 1]} : vector<2x192xf32> to vector<2x64xf32>
      %59 = arith.addf %57, %58 : vector<2x64xf32>
      %60 = arith.negf %59 : vector<2x64xf32>
      %61 = math.exp %60 : vector<2x64xf32>
      %cst_31 = arith.constant 1.000000e+00 : f32
      %62 = vector.broadcast %cst_31 : f32 to vector<2x64xf32>
      %63 = arith.addf %62, %61 : vector<2x64xf32>
      %64 = arith.divf %62, %63 : vector<2x64xf32>
      %65 = vector.extract_strided_slice %52 {offsets = [0, 64], sizes = [2, 64], strides = [1, 1]} : vector<2x192xf32> to vector<2x64xf32>
      %66 = vector.extract_strided_slice %56 {offsets = [0, 64], sizes = [2, 64], strides = [1, 1]} : vector<2x192xf32> to vector<2x64xf32>
      %67 = arith.addf %65, %66 : vector<2x64xf32>
      %68 = arith.negf %67 : vector<2x64xf32>
      %69 = math.exp %68 : vector<2x64xf32>
      %cst_32 = arith.constant 1.000000e+00 : f32
      %70 = vector.broadcast %cst_32 : f32 to vector<2x64xf32>
      %71 = arith.addf %70, %69 : vector<2x64xf32>
      %72 = arith.divf %70, %71 : vector<2x64xf32>
      %73 = vector.extract_strided_slice %52 {offsets = [0, 128], sizes = [2, 64], strides = [1, 1]} : vector<2x192xf32> to vector<2x64xf32>
      %74 = vector.extract_strided_slice %56 {offsets = [0, 128], sizes = [2, 64], strides = [1, 1]} : vector<2x192xf32> to vector<2x64xf32>
      %75 = arith.mulf %64, %74 : vector<2x64xf32>
      %76 = arith.addf %73, %75 : vector<2x64xf32>
      %77 = math.tanh %76 : vector<2x64xf32>
      %cst_33 = arith.constant 1.000000e+00 : f32
      %78 = vector.broadcast %cst_33 : f32 to vector<2x64xf32>
      %79 = arith.subf %78, %72 : vector<2x64xf32>
      %80 = arith.mulf %79, %77 : vector<2x64xf32>
      %81 = arith.mulf %72, %arg15 : vector<2x64xf32>
      %82 = arith.addf %80, %81 : vector<2x64xf32>
      %83 = arith.index_cast %49 : i32 to index
      %c0_34 = arith.constant 0 : index
      %c0_35 = arith.constant 0 : index
      %84 = vector.load %arg10[%83, %c0_34, %c0_35] : memref<8x2x64xf32, #tpu.memory_space<vmem>>, vector<1x2x64xf32>
      %85 = vector.shape_cast %84 : vector<1x2x64xf32> to vector<2x64xf32>
      %86 = vector.shape_cast %82 : vector<2x64xf32> to vector<1x2x64xf32>
      tpu.vector_store %arg10[%83, %c0_34, %c0_35], %86 {strides = array<i32>} : memref<8x2x64xf32, #tpu.memory_space<vmem>>, vector<1x2x64xf32>,
      scf.yield %44, %82 : vector<2x64xf32>, vector<2x64xf32>
    }
    %c8_i32_19 = arith.constant 8 : i32
    return
  }
}

module attributes {stable_mosaic.version = 11 : i64} {
  func.func @_ffn_out_kernel(%arg0: i32, %arg1: memref<16x64xf32, #tpu.memory_space<vmem>>, %arg2: memref<16x64xf32, #tpu.memory_space<vmem>>, %arg3: memref<16x32xf32, #tpu.memory_space<vmem>>, %arg4: memref<64x32xbf16, #tpu.memory_space<vmem>>, %arg5: memref<64x32xbf16, #tpu.memory_space<vmem>>, %arg6: memref<1x32xf32, #tpu.memory_space<vmem>>, %arg7: memref<1x32xf32, #tpu.memory_space<vmem>>, %arg8: memref<1x32xf32, #tpu.memory_space<vmem>>, %arg9: memref<16x32xf32, #tpu.memory_space<vmem>>) attributes {dimension_semantics = [#tpu.dimension_semantics<parallel>], iteration_bounds = array<i64: 1>, scalar_prefetch = 0 : i64, scratch_operands = 0 : i64, tpu.core_type = #tpu.core_type<tc>, window_params = [{transform_indices = @transform_0, window_bounds = array<i64: 16, 64>}, {transform_indices = @transform_1, window_bounds = array<i64: 16, 64>}, {transform_indices = @transform_2, window_bounds = array<i64: 16, 32>}, {pipeline_mode = #tpu.pipeline_mode<synchronous>, transform_indices = @transform_3, window_bounds = array<i64: 64, 32>}, {pipeline_mode = #tpu.pipeline_mode<synchronous>, transform_indices = @transform_4, window_bounds = array<i64: 64, 32>}, {pipeline_mode = #tpu.pipeline_mode<synchronous>, transform_indices = @transform_5, window_bounds = array<i64: 1, 32>}, {pipeline_mode = #tpu.pipeline_mode<synchronous>, transform_indices = @transform_6, window_bounds = array<i64: 1, 32>}, {pipeline_mode = #tpu.pipeline_mode<synchronous>, transform_indices = @transform_7, window_bounds = array<i64: 1, 32>}, {transform_indices = @transform_8, window_bounds = array<i64: 16, 32>}]} {
    %c0 = arith.constant 0 : index
    %c0_0 = arith.constant 0 : index
    %0 = vector.load %arg1[%c0, %c0_0] : memref<16x64xf32, #tpu.memory_space<vmem>>, vector<16x64xf32>
    %c0_1 = arith.constant 0 : index
    %c0_2 = arith.constant 0 : index
    %1 = vector.load %arg2[%c0_1, %c0_2] : memref<16x64xf32, #tpu.memory_space<vmem>>, vector<16x64xf32>
    %cst = arith.constant 0.000000e+00 : f32
    %2 = vector.broadcast %cst : f32 to vector<16x64xf32>
    %3 = arith.cmpf oge, %0, %2 : vector<16x64xf32>
    %cst_3 = arith.constant 0.00999999977 : f32
    %4 = vector.broadcast %cst_3 : f32 to vector<16x64xf32>
    %5 = arith.mulf %4, %0 : vector<16x64xf32>
    %6 = arith.select %3, %0, %5 : vector<16x64xi1>, vector<16x64xf32>
    %cst_4 = arith.constant 0.000000e+00 : f32
    %7 = vector.broadcast %cst_4 : f32 to vector<16x64xf32>
    %8 = arith.cmpf oge, %1, %7 : vector<16x64xf32>
    %cst_5 = arith.constant 0.00999999977 : f32
    %9 = vector.broadcast %cst_5 : f32 to vector<16x64xf32>
    %10 = arith.mulf %9, %1 : vector<16x64xf32>
    %11 = arith.select %8, %1, %10 : vector<16x64xi1>, vector<16x64xf32>
    %12 = arith.truncf %6 : vector<16x64xf32> to vector<16x64xbf16>
    %c0_6 = arith.constant 0 : index
    %c0_7 = arith.constant 0 : index
    %13 = vector.load %arg4[%c0_6, %c0_7] : memref<64x32xbf16, #tpu.memory_space<vmem>>, vector<64x32xbf16>
    %cst_8 = arith.constant dense<0.000000e+00> : vector<16x32xf32>
    %14 = tpu.matmul %12, %13, %cst_8 {dimension_numbers = #tpu.dot_dimension_numbers<[1], [0], [0], [1], [0, 0, 1, 1], [], []>} : vector<16x64xbf16>, vector<64x32xbf16>, vector<16x32xf32> -> vector<16x32xf32>
    %15 = arith.truncf %11 : vector<16x64xf32> to vector<16x64xbf16>
    %c0_9 = arith.constant 0 : index
    %c0_10 = arith.constant 0 : index
    %16 = vector.load %arg5[%c0_9, %c0_10] : memref<64x32xbf16, #tpu.memory_space<vmem>>, vector<64x32xbf16>
    %cst_11 = arith.constant dense<0.000000e+00> : vector<16x32xf32>
    %17 = tpu.matmul %15, %16, %cst_11 {dimension_numbers = #tpu.dot_dimension_numbers<[1], [0], [0], [1], [0, 0, 1, 1], [], []>} : vector<16x64xbf16>, vector<64x32xbf16>, vector<16x32xf32> -> vector<16x32xf32>
    %18 = arith.addf %14, %17 : vector<16x32xf32>
    %c0_12 = arith.constant 0 : index
    %c0_13 = arith.constant 0 : index
    %19 = vector.load %arg6[%c0_12, %c0_13] : memref<1x32xf32, #tpu.memory_space<vmem>>, vector<1x32xf32>
    %20 = vector.broadcast %19 : vector<1x32xf32> to vector<16x32xf32>
    %21 = arith.addf %18, %20 : vector<16x32xf32>
    %c0_14 = arith.constant 0 : index
    %c0_15 = arith.constant 0 : index
    %22 = vector.load %arg3[%c0_14, %c0_15] : memref<16x32xf32, #tpu.memory_space<vmem>>, vector<16x32xf32>
    %23 = arith.addf %21, %22 : vector<16x32xf32>
    %c0_16 = arith.constant 0 : index
    %c0_17 = arith.constant 0 : index
    %24 = vector.load %arg7[%c0_16, %c0_17] : memref<1x32xf32, #tpu.memory_space<vmem>>, vector<1x32xf32>
    %c0_18 = arith.constant 0 : index
    %c0_19 = arith.constant 0 : index
    %25 = vector.load %arg8[%c0_18, %c0_19] : memref<1x32xf32, #tpu.memory_space<vmem>>, vector<1x32xf32>
    %cst_20 = arith.constant dense<0.000000e+00> : vector<16xf32>
    %26 = vector.multi_reduction <add>, %23, %cst_20 [1] : vector<16x32xf32> to vector<16xf32>
    %27 = vector.shape_cast %26 : vector<16xf32> to vector<16x1xf32>
    %cst_21 = arith.constant 3.200000e+01 : f32
    %28 = vector.broadcast %cst_21 : f32 to vector<16x1xf32>
    %29 = arith.divf %27, %28 : vector<16x1xf32>
    %30 = vector.broadcast %29 : vector<16x1xf32> to vector<16x32xf32>
    %31 = arith.subf %23, %30 : vector<16x32xf32>
    %32 = arith.mulf %31, %31 : vector<16x32xf32>
    %cst_22 = arith.constant dense<0.000000e+00> : vector<16xf32>
    %33 = vector.multi_reduction <add>, %32, %cst_22 [1] : vector<16x32xf32> to vector<16xf32>
    %34 = vector.shape_cast %33 : vector<16xf32> to vector<16x1xf32>
    %cst_23 = arith.constant 3.200000e+01 : f32
    %35 = vector.broadcast %cst_23 : f32 to vector<16x1xf32>
    %36 = arith.divf %34, %35 : vector<16x1xf32>
    %37 = vector.broadcast %29 : vector<16x1xf32> to vector<16x32xf32>
    %38 = arith.subf %23, %37 : vector<16x32xf32>
    %cst_24 = arith.constant 9.99999974E-6 : f32
    %39 = vector.broadcast %cst_24 : f32 to vector<16x1xf32>
    %40 = arith.addf %36, %39 : vector<16x1xf32>
    %41 = math.rsqrt %40 : vector<16x1xf32>
    %42 = vector.broadcast %41 : vector<16x1xf32> to vector<16x32xf32>
    %43 = arith.mulf %38, %42 : vector<16x32xf32>
    %44 = vector.broadcast %24 : vector<1x32xf32> to vector<16x32xf32>
    %45 = arith.mulf %43, %44 : vector<16x32xf32>
    %46 = vector.broadcast %25 : vector<1x32xf32> to vector<16x32xf32>
    %47 = arith.addf %45, %46 : vector<16x32xf32>
    %c0_25 = arith.constant 0 : index
    %c0_26 = arith.constant 0 : index
    %48 = vector.load %arg9[%c0_25, %c0_26] : memref<16x32xf32, #tpu.memory_space<vmem>>, vector<16x32xf32>
    tpu.vector_store %arg9[%c0_25, %c0_26], %47 {strides = array<i32>} : memref<16x32xf32, #tpu.memory_space<vmem>>, vector<16x32xf32>,
    return
  }
  func.func @transform_0(%arg0: i32) -> (i32, i32) {
    %c0_i32 = arith.constant 0 : i32
    %c0_i32_0 = arith.constant 0 : i32
    return %arg0, %c0_i32 : i32, i32
  }
  func.func @transform_1(%arg0: i32) -> (i32, i32) {
    %c0_i32 = arith.constant 0 : i32
    %c0_i32_0 = arith.constant 0 : i32
    return %arg0, %c0_i32 : i32, i32
  }
  func.func @transform_2(%arg0: i32) -> (i32, i32) {
    %c0_i32 = arith.constant 0 : i32
    %c0_i32_0 = arith.constant 0 : i32
    return %arg0, %c0_i32 : i32, i32
  }
  func.func @transform_3(%arg0: i32) -> (i32, i32) {
    %c0_i32 = arith.constant 0 : i32
    %c0_i32_0 = arith.constant 0 : i32
    %c0_i32_1 = arith.constant 0 : i32
    return %c0_i32, %c0_i32_0 : i32, i32
  }
  func.func @transform_4(%arg0: i32) -> (i32, i32) {
    %c0_i32 = arith.constant 0 : i32
    %c0_i32_0 = arith.constant 0 : i32
    %c0_i32_1 = arith.constant 0 : i32
    return %c0_i32, %c0_i32_0 : i32, i32
  }
  func.func @transform_5(%arg0: i32) -> (i32, i32) {
    %c0_i32 = arith.constant 0 : i32
    %c0_i32_0 = arith.constant 0 : i32
    %c0_i32_1 = arith.constant 0 : i32
    return %c0_i32, %c0_i32_0 : i32, i32
  }
  func.func @transform_6(%arg0: i32) -> (i32, i32) {
    %c0_i32 = arith.constant 0 : i32
    %c0_i32_0 = arith.constant 0 : i32
    %c0_i32_1 = arith.constant 0 : i32
    return %c0_i32, %c0_i32_0 : i32, i32
  }
  func.func @transform_7(%arg0: i32) -> (i32, i32) {
    %c0_i32 = arith.constant 0 : i32
    %c0_i32_0 = arith.constant 0 : i32
    %c0_i32_1 = arith.constant 0 : i32
    return %c0_i32, %c0_i32_0 : i32, i32
  }
  func.func @transform_8(%arg0: i32) -> (i32, i32) {
    %c0_i32 = arith.constant 0 : i32
    %c0_i32_0 = arith.constant 0 : i32
    return %arg0, %c0_i32 : i32, i32
  }
}

</mosaic_0001>

<bundles_post_ra>
// kernel: transformer_block.5
= control target key start
LH: loop header
LB: loop body
LE: loop exit
PB: predicated region body
PF: predicated region fallthrough
CT: control target
= control target key end

     0   :  { %15 = vsyncpa [#allocation3], 0  ;;  %s441_s0 = inlined_call_operand.hbm [shape: f32[16,32], index: 0, kind: input, shape index: {}]   ;;  %s442_s1 = inlined_call_operand.vmem [shape: f32[1,32], index: 1, kind: input, shape index: {}]   ;;  %s443_s2 = inlined_call_operand.vmem [shape: f32[1,32], index: 2, kind: input, shape index: {}]   ;;  %s444_s3 = inlined_call_operand.vmem [shape: bf16[32,32], index: 3, kind: input, shape index: {}]   ;;  %s445_s4 = inlined_call_operand.vmem [shape: f32[1,32], index: 4, kind: input, shape index: {}]   ;;  %s446_s5 = inlined_call_operand.hbm [shape: bf16[32,64], index: 5, kind: input, shape index: {}]   ;;  %s447_s6 = inlined_call_operand.vmem [shape: f32[1,64], index: 6, kind: input, shape index: {}]   ;;  %s448_s7 = inlined_call_operand.vmem [shape: bf16[16,32], index: 7, kind: output, shape index: {0}]   ;;  %s449_s8 = inlined_call_operand.vmem [shape: bf16[16,32], index: 8, kind: output, shape index: {1}]   ;;  %s450_s9 = inlined_call_operand.vmem [shape: bf16[16,32], index: 9, kind: output, shape index: {2}]  }
   0x1   :  { %s21_s11 = sshll.u32 %s441_s0, 4  ;;  %s22_s11 = int_to_ptr.hbm [resolvable:$true] %s21_s11 }
   0x2   :  { %16 = vsyncpa [#allocation5], 0  ;;  %s329_s12 = smov [#allocation2]   ;;  %s42_s16 = sshll.u32 %s446_s5, 4  ;;  %s43_s16 = int_to_ptr.hbm [resolvable:$true] %s42_s16 }
   0x3   :  { %s23_s13 = sshll.u32 %s329_s12, 4  ;;  %s330_s17 = smov 128   ;;  %s24_s13 = int_to_ptr.vmem [resolvable:$true] %s23_s13 }
   0x4   :  { %s331_s18 = smov 8   ;;  %s332_s19 = smov [#allocation4]  }
   0x5   :  { %29 = dma.hbm_to_vmem [thread:$0]  %s22_s11, 256, %s24_s13, [#allocation3], %s330_s17, %s330_s17, %s331_s18  }
   0x6   :  { %s44_s20 = sshll.u32 %s332_s19, 4  ;;  %s333_s21 = smov 64   ;;  %s45_s20 = int_to_ptr.vmem [resolvable:$true] %s44_s20 }
   0x7   :  { %s334_s22 = smov 4  }
   0x8   :  { %50 = dma.hbm_to_vmem [thread:$0]  %s43_s16, 256, %s45_s20, [#allocation5], %s333_s21, %s333_s21, %s334_s22  }
   0x9   :  { %325 = dma.done.wait [#allocation3], 256  }
   0xa   :  { %326 = vsyncadd [#allocation3], 4294967040 }
   0xb   :  { %327 = dma.done.wait [#allocation5], 256  }
   0xc   :  { %328 = vsyncadd [#allocation5], 4294967040  ;;  %vm66_vm0 = vcmask 261120   ;;  %v62_v0 = vld [vmem:[#allocation2] sm:$0xff]  ;;  %v63_v2 = vld [vmem:[#allocation2 + $0x8] sm:$0xff]  ;;  %v335_v4 = vmov 32.0  }
   0xd   :  { %v67_v1 = vsel %vm66_vm0, %v62_v0, 0.0  ;;  %v70_v3 = vsel %vm66_vm0, %v63_v2, 0.0  ;;  %271 = vrcp.f32 %v335_v4  ;;  %v258_v7 = vld [vmem:[#allocation4 + $0x8] sm:$0xff]  ;;  %v257_v9 = vld [vmem:[#allocation4] sm:$0xff]  ;;  %v166_v10 = vpack.c.bf16 %v63_v2, %v62_v0  ;;  %v256_v24 = vld [vmem:[%s444_s3 + $0x8] sm:$0xff]  ;;  %s336_s28 = smov 96  }
   0xe   :  { %68 = vadd.xlane.f32.xlu0 %v67_v1  ;;  %196 = vmatpush.bf16.msra.mxu1 %v258_v7  ;;  %v255_v26 = vld [vmem:[%s444_s3] sm:$0xff]  ;;  %vm206_vm2 = vcmask 257024  }
   0xf   :  { %158 = vmatpush.bf16.msra.mxu0 %v256_v24  ;;  %v269_v29 = vld [vmem:[%s447_s6] ss:$0 sm:$0xff] }
  0x10   :  { %v267_v52 = vld [vmem:[%s442_s1] ss:$0 sm:$0xff] }
  0x11   :  { %v268_v57 = vld [vmem:[%s443_s2] ss:$0 sm:$0xff] }
  0x12   :  { %197 = vmatpush.bf16.msra.mxu1 %v257_v9 }
  0x13   :  { %v272_v5 = vpop.eup %271  ;;  %159 = vmatpush.bf16.msra.mxu0 %v255_v26 }
  0x14   :  { %v74_v6 = vmul.f32 32.0, %v272_v5  ;;  %vm78_vm1 = vweird.f32 %v272_v5 }
  0x15   :  { %254 = vmatmul.msk.bf16.vlgmr.msra.gmra.mxu1 %vm66_vm0, %v166_v10 }
  0x16   :  { %71 = vadd.xlane.f32.xlu0 %v70_v3  ;;  %v75_v8 = vsub.f32 1.0, %v74_v6 }
  0x18   :  { %v76_v11 = vmul.f32 %v272_v5, %v75_v8 }
  0x1a   :  { %v77_v12 = vadd.f32 %v272_v5, %v76_v11 }
  0x1c   :  { %v79_v13 = vsel %vm78_vm1, %v272_v5, %v77_v12 }
  0x81   :  { %v69_v14 = vpop.xlane.xlu0 %68 }
  0x82   :  { %v80_v15 = vmul.f32 %v79_v13, %v69_v14 }
  0x84   :  { %v82_v16 = vsub.f32 %v62_v0, %v80_v15  ;;  %v270_v0 = vld [vmem:[%s445_s4] ss:$0 sm:$0xff] }
  0x86   :  { %v84_v17 = vmul.f32 %v82_v16, %v82_v16 }
  0x88   :  { %v86_v18 = vsel %vm66_vm0, %v84_v17, 0.0 }
  0x89   :  { %87 = vadd.xlane.f32.xlu1 %v86_v18  ;;  %v72_v19 = vpop.xlane.xlu0 %71 }
  0x8a   :  { %v81_v20 = vmul.f32 %v79_v13, %v72_v19 }
  0x8c   :  { %v83_v21 = vsub.f32 %v63_v2, %v81_v20 }
  0x8e   :  { %v85_v22 = vmul.f32 %v83_v21, %v83_v21 }
  0x90   :  { %v89_v23 = vsel %vm66_vm0, %v85_v22, 0.0 }
  0x91   :  { %90 = vadd.xlane.f32.xlu1 %v89_v23 }
  0x92   :  { %v199_v30 = vpop.f32.mrf.mxu1 }
  0x93   :  { %v200_v33 = vadd.f32 %v269_v29, %v199_v30 }
  0x95   :  { %v209_v36 = vpack.c.bf16 %v200_v33, %v200_v33 }
  0x97   :  { %211 = vst.msk [vmem:[%s449_s8] sm:$0xf] %vm206_vm2, %v209_v36  ;;  %215 = vrot.lane.b32.xlu2 %v209_v36, %s336_s28 }
  0x9a   :  { %v201_v39 = vpop.f32.mrf.mxu1 }
  0x9b   :  { %v202_v41 = vadd.f32 %v269_v29, %v201_v39 }
  0x9d   :  { %v210_v43 = vpack.c.bf16 %v202_v41, %v202_v41 }
  0x9f   :  { %212 = vst.msk [vmem:[%s449_s8 + $0x4] sm:$0xf] %vm206_vm2, %v210_v43  ;;  %217 = vrot.lane.b32.xlu2 %v210_v43, %s336_s28 }
  0xf1   :  { %v216_v62 = vpop.permute.xlu2 %215 }
  0xf2   :  { %221 = vst.msk [vmem:[%s450_s9] sm:$0xf] %vm206_vm2, %v216_v62 }
  0xf9   :  { %v218_v63 = vpop.permute.xlu2 %217 }
  0xfa   :  { %222 = vst.msk [vmem:[%s450_s9 + $0x4] sm:$0xf] %vm206_vm2, %v218_v63 }
  0xfc   :  { %v88_v25 = vpop.xlane.xlu1 %87 }
  0xfd   :  { %v92_v27 = vmul.f32 %v88_v25, %v79_v13 }
  0xff   :  { %v94_v28 = vadd.f32 1e-05, %v92_v27 }
 0x101   :  { %273 = vrsqrt.f32 %v94_v28  ;;  %vm102_vm4 = vweird.f32 %v94_v28 }
 0x104   :  { %v91_v31 = vpop.xlane.xlu1 %90 }
 0x105   :  { %v93_v32 = vmul.f32 %v91_v31, %v79_v13 }
 0x107   :  { %v274_v34 = vpop.eup %273  ;;  %v95_v35 = vadd.f32 1e-05, %v93_v32 }
 0x108   :  { %v97_v37 = vmul.f32 %v274_v34, %v94_v28  ;;  %vm103_vm3 = vweird.f32 %v274_v34 }
 0x109   :  { %275 = vrsqrt.f32 %v95_v35  ;;  %vm104_vm5 = vmor %vm102_vm4, %vm103_vm3  ;;  %vm112_vm7 = vweird.f32 %v95_v35 }
 0x10a   :  { %v98_v38 = vmul.f32 %v274_v34, %v97_v37 }
 0x10c   :  { %v99_v40 = vmul.f32 0.5, %v98_v38 }
 0x10e   :  { %v100_v42 = vsub.f32 1.5, %v99_v40 }
 0x10f   :  { %v276_v44 = vpop.eup %275 }
 0x110   :  { %v101_v45 = vmul.f32 %v274_v34, %v100_v42  ;;  %v107_v46 = vmul.f32 %v276_v44, %v95_v35  ;;  %vm113_vm6 = vweird.f32 %v276_v44 }
 0x111   :  { %vm114_vm8 = vmor %vm112_vm7, %vm113_vm6 }
 0x112   :  { %v108_v47 = vmul.f32 %v276_v44, %v107_v46  ;;  %v105_v48 = vsel %vm104_vm5, %v274_v34, %v101_v45 }
 0x113   :  { %v116_v51 = vmul.f32 %v105_v48, %v82_v16 }
 0x114   :  { %v109_v49 = vmul.f32 0.5, %v108_v47 }
 0x115   :  { %v121_v56 = vmul.f32 %v267_v52, %v116_v51 }
 0x116   :  { %v110_v50 = vsub.f32 1.5, %v109_v49 }
 0x117   :  { %v126_v59 = vadd.f32 %v268_v57, %v121_v56 }
 0x118   :  { %v111_v53 = vmul.f32 %v276_v44, %v110_v50 }
 0x11a   :  { %v115_v54 = vsel %vm114_vm8, %v276_v44, %v111_v53 }
 0x11b   :  { %v117_v55 = vmul.f32 %v115_v54, %v83_v21 }
 0x11d   :  { %v122_v58 = vmul.f32 %v267_v52, %v117_v55 }
 0x11f   :  { %v127_v60 = vadd.f32 %v268_v57, %v122_v58 }
 0x121   :  { %v128_v61 = vpack.c.bf16 %v127_v60, %v126_v59 }
 0x123   :  { %245 = vmatmul.msk.bf16.vlgmr.msra.gmra.mxu0 %vm66_vm0, %v128_v61 }
 0x1a0   :  { %v161_v1 = vpop.f32.mrf.mxu0 }
 0x1a1   :  { %v162_v2 = vadd.f32 %v270_v0, %v161_v1 }
 0x1a3   :  { %v204_v3 = vpack.c.bf16 %v162_v2, %v162_v2 }
 0x1a5   :  { %207 = vst.msk [vmem:[%s448_s7] sm:$0xf] %vm206_vm2, %v204_v3 }
 0x1a8   :  { %v163_v4 = vpop.f32.mrf.mxu0 }
 0x1a9   :  { %v164_v5 = vadd.f32 %v270_v0, %v163_v4 }
 0x1ab   :  { %v205_v6 = vpack.c.bf16 %v164_v5, %v164_v5 }
 0x1ad   :  { %208 = vst.msk [vmem:[%s448_s7 + $0x4] sm:$0xf] %vm206_vm2, %v205_v6 }
 0x1ae   :  { %235 = vsyncpa [#allocation3], 1 }
 0x1af   :  { %236 = vsyncpa [#allocation5], 1 }

// kernel: transformer_block.7
= control target key start
LH: loop header
LB: loop body
LE: loop exit
PB: predicated region body
PF: predicated region fallthrough
CT: control target
= control target key end

     0   :  { %vm45_vm0 = vcmask 261120   ;;  %s139_s2 = inlined_call_operand.vmem [shape: bf16[32,32], index: 2, kind: input, shape index: {}]   ;;  %s140_s3 = inlined_call_operand.vmem [shape: f32[1,32], index: 3, kind: input, shape index: {}]   ;;  %s141_s0 = inlined_call_operand.vmem [shape: bf16[16,32], index: 0, kind: input, shape index: {}]   ;;  %s142_s1 = inlined_call_operand.vmem [shape: f32[16,32], index: 1, kind: input, shape index: {}]   ;;  %s143_s4 = inlined_call_operand.vmem [shape: f32[16,32], index: 4, kind: output, shape index: {}]  }
   0x1   :  { %v88_v0 = vld [vmem:[%s139_s2 + $0x8] sm:$0xff]  ;;  %v87_v1 = vld [vmem:[%s139_s2] sm:$0xff] }
   0x2   :  { %55 = vmatpush.bf16.msra.mxu0 %v88_v0  ;;  %v86_v2 = vld [vmem:[%s141_s0] sm:$0xff]  ;;  %v64_v9 = vld [vmem:[%s142_s1 + $0x8] sm:$0xff] }
   0x3   :  { %v89_v3 = vld [vmem:[%s140_s3] ss:$0 sm:$0xff] }
   0x4   :  { %v63_v5 = vld [vmem:[%s142_s1] sm:$0xff] }
   0x6   :  { %56 = vmatpush.bf16.msra.mxu0 %v87_v1 }
   0x9   :  { %85 = vmatmul.msk.bf16.vlgmr.msra.gmra.mxu0 %vm45_vm0, %v86_v2 }
  0x86   :  { %v58_v4 = vpop.f32.mrf.mxu0 }
  0x87   :  { %v59_v6 = vadd.f32 %v89_v3, %v58_v4 }
  0x89   :  { %v65_v7 = vadd.f32 %v63_v5, %v59_v6 }
  0x8b   :  { %67 = vst.msk [vmem:[%s143_s4] sm:$0xff] %vm45_vm0, %v65_v7 }
  0x8e   :  { %v60_v8 = vpop.f32.mrf.mxu0 }
  0x8f   :  { %v61_v10 = vadd.f32 %v89_v3, %v60_v8 }
  0x91   :  { %v66_v11 = vadd.f32 %v64_v9, %v61_v10 }
  0x93   :  { %68 = vst.msk [vmem:[%s143_s4 + $0x8] sm:$0xff] %vm45_vm0, %v66_v11 }

// kernel: transformer_block.6
= control target key start
LH: loop header
LB: loop body
LE: loop exit
PB: predicated region body
PF: predicated region fallthrough
CT: control target
= control target key end

     0   :  { %vm36_vm0 = vcmask 64512   ;;  %vm19_vm1 = vcmask 7168   ;;  %v918_v26 = vmov -inf   ;;  %v919_v49 = vmov 0   ;;  %s1247_s1 = inlined_call_operand.vmem [shape: bf16[8,8,8], index: 1, kind: input, shape index: {}]   ;;  %s1248_s0 = inlined_call_operand.vmem [shape: bf16[8,8,8], index: 0, kind: input, shape index: {}]   ;;  %s1249_s2 = inlined_call_operand.vmem [shape: bf16[8,8,8], index: 2, kind: input, shape index: {}]   ;;  %s1250_s3 = inlined_call_operand.vmem [shape: bf16[8,8,8], index: 3, kind: output, shape index: {}]  }
   0x1   :  { %v53_v0 = vld [vmem:[%s1247_s1] sm:$0xf]  ;;  %v55_v1 = vld [vmem:[%s1247_s1 + $0x8] sm:$0xf]  ;;  %v56_v2 = vld [vmem:[%s1247_s1 + $0xc] sm:$0xf]  ;;  %869 = vset.pattern.permute.xlu1 %v919_v49  ;;  %867 = vset.pattern.permute.xlu2 %v919_v49 }
   0x2   :  { %v66_v3 = vsel %vm36_vm0, %v53_v0, 0  ;;  %v104_v4 = vsel %vm36_vm0, %v55_v1, 0  ;;  %v123_v5 = vsel %vm36_vm0, %v56_v2, 0  ;;  %v59_v6 = vld [vmem:[%s1247_s1 + $0x18] sm:$0xf]  ;;  %20 = vst.msk [vmem:[#allocation2] sm:$0xff] %vm19_vm1, %v918_v26  ;;  %868 = vset.pattern.permute.xlu0 %v919_v49 }
   0x3   :  { %75 = vmatpush.bf16.xpose.msra.mxu0 %v66_v3  ;;  %113 = vmatpush.bf16.xpose.msra.mxu2 %v104_v4  ;;  %v180_v7 = vsel %vm36_vm0, %v59_v6, 0  ;;  %v54_v8 = vld [vmem:[%s1247_s1 + $0x4] sm:$0xf]  ;;  %v60_v9 = vld [vmem:[%s1247_s1 + $0x1c] sm:$0xf]  ;;  %21 = vst.msk [vmem:[#allocation2 + $0x8] sm:$0xff] %vm19_vm1, %v918_v26 }
   0x4   :  { %132 = vmatpush.bf16.xpose.msra.mxu3 %v123_v5  ;;  %v85_v10 = vsel %vm36_vm0, %v54_v8, 0  ;;  %v199_v11 = vsel %vm36_vm0, %v60_v9, 0  ;;  %v57_v12 = vld [vmem:[%s1247_s1 + $0x10] sm:$0xf]  ;;  %v45_v14 = vld [vmem:[%s1248_s0] sm:$0xf] }
   0x5   :  { %94 = vmatpush.bf16.xpose.msra.mxu1 %v85_v10  ;;  %v142_v13 = vsel %vm36_vm0, %v57_v12, 0  ;;  %v47_v15 = vld [vmem:[%s1248_s0 + $0x8] sm:$0xf]  ;;  %v58_v16 = vld [vmem:[%s1247_s1 + $0x14] sm:$0xf]  ;;  %22 = vst.msk [vmem:[#allocation2 + $0x10] sm:$0xff] %vm19_vm1, %v918_v26 }
   0x6   :  { %v48_v17 = vld [vmem:[%s1248_s0 + $0xc] sm:$0xf]  ;;  %v161_v18 = vsel %vm36_vm0, %v58_v16, 0  ;;  %v46_v19 = vld [vmem:[%s1248_s0 + $0x4] sm:$0xf]  ;;  %23 = vst.msk [vmem:[#allocation2 + $0x18] sm:$0xff] %vm19_vm1, %v918_v26 }
   0x7   :  { %v51_v20 = vld [vmem:[%s1248_s0 + $0x18] sm:$0xf]  ;;  %v49_v21 = vld [vmem:[%s1248_s0 + $0x10] sm:$0xf]  ;;  %v52_v22 = vld [vmem:[%s1248_s0 + $0x1c] sm:$0xf] }
   0x8   :  { %v50_v23 = vld [vmem:[%s1248_s0 + $0x14] sm:$0xf]  ;;  %24 = vst.msk [vmem:[#allocation2 + $0x20] sm:$0xff] %vm19_vm1, %v918_v26  ;;  %v920_v50 = vmov 0.0   ;;  %vm474_vm2 = vcmask 1043456   ;;  %vm835_vm7 = vcmask 60416  }
   0x9   :  { %25 = vst.msk [vmem:[#allocation2 + $0x28] sm:$0xff] %vm19_vm1, %v918_v26  ;;  %v214_v51 = vld [vmem:[#allocation2] sm:$0xff] }
   0xa   :  { %848 = vmatmul.msk.bf16.vlgmr.msra.gmra.mxu0 %vm36_vm0, %v45_v14  ;;  %850 = vmatmul.msk.bf16.vlgmr.msra.gmra.mxu2 %vm36_vm0, %v47_v15  ;;  %26 = vst.msk [vmem:[#allocation2 + $0x30] sm:$0xff] %vm19_vm1, %v918_v26  ;;  %v215_v56 = vld [vmem:[#allocation2 + $0x8] sm:$0xff] }
   0xb   :  { %189 = vmatpush.bf16.xpose.msrb.mxu2 %v180_v7  ;;  %151 = vmatpush.bf16.xpose.msrb.mxu0 %v142_v13  ;;  %27 = vst.msk [vmem:[#allocation2 + $0x38] sm:$0xff] %vm19_vm1, %v918_v26 }
   0xc   :  { %208 = vmatpush.bf16.xpose.msrb.mxu3 %v199_v11  ;;  %849 = vmatmul.msk.bf16.vlgmr.msra.gmra.mxu1 %vm36_vm0, %v46_v19  ;;  %38 = vst.msk [vmem:[#allocation4 + $0x8] sm:$0xff] %vm36_vm0, %v920_v50  ;;  %v216_v54 = vld [vmem:[#allocation2 + $0x10] sm:$0xff] }
   0xd   :  { %170 = vmatpush.bf16.xpose.msrb.mxu1 %v161_v18  ;;  %851 = vmatmul.msk.bf16.vlgmr.msra.gmra.mxu3 %vm36_vm0, %v48_v17  ;;  %28 = vst.msk [vmem:[#allocation3] sm:$0xff] %vm19_vm1, %v920_v50  ;;  %v217_v61 = vld [vmem:[#allocation2 + $0x18] sm:$0xff] }
   0xe   :  { %29 = vst.msk [vmem:[#allocation3 + $0x8] sm:$0xff] %vm19_vm1, %v920_v50 }
   0xf   :  { %30 = vst.msk [vmem:[#allocation3 + $0x10] sm:$0xff] %vm19_vm1, %v920_v50  ;;  %v218_v4 = vld [vmem:[#allocation2 + $0x20] sm:$0xff] }
  0x10   :  { %31 = vst.msk [vmem:[#allocation3 + $0x18] sm:$0xff] %vm19_vm1, %v920_v50  ;;  %v219_v1 = vld [vmem:[#allocation2 + $0x28] sm:$0xff] }
  0x11   :  { %32 = vst.msk [vmem:[#allocation3 + $0x20] sm:$0xff] %vm19_vm1, %v920_v50  ;;  %v1065_v3 = vld [vmem:[#allocation2 + $0x30] sm:$0xff] }
  0x12   :  { %33 = vst.msk [vmem:[#allocation3 + $0x28] sm:$0xff] %vm19_vm1, %v920_v50  ;;  %v1080_v16 = vld [vmem:[#allocation2 + $0x38] sm:$0xff] }
  0x13   :  { %34 = vst.msk [vmem:[#allocation3 + $0x30] sm:$0xff] %vm19_vm1, %v920_v50 }
  0x14   :  { %35 = vst.msk [vmem:[#allocation3 + $0x38] sm:$0xff] %vm19_vm1, %v920_v50 }
  0x15   :  { %37 = vst.msk [vmem:[#allocation4] sm:$0xff] %vm36_vm0, %v920_v50 }
  0x16   :  { %39 = vst.msk [vmem:[#allocation4 + $0x10] sm:$0xff] %vm36_vm0, %v920_v50 }
  0x17   :  { %40 = vst.msk [vmem:[#allocation4 + $0x18] sm:$0xff] %vm36_vm0, %v920_v50 }
  0x18   :  { %41 = vst.msk [vmem:[#allocation4 + $0x20] sm:$0xff] %vm36_vm0, %v920_v50 }
  0x19   :  { %42 = vst.msk [vmem:[#allocation4 + $0x28] sm:$0xff] %vm36_vm0, %v920_v50 }
  0x1a   :  { %854 = vmatmul.msk.bf16.vlgmr.msrb.gmra.mxu2 %vm36_vm0, %v51_v20  ;;  %852 = vmatmul.msk.bf16.vlgmr.msrb.gmra.mxu0 %vm36_vm0, %v49_v21  ;;  %43 = vst.msk [vmem:[#allocation4 + $0x30] sm:$0xff] %vm36_vm0, %v920_v50 }
  0x1b   :  { %44 = vst.msk [vmem:[#allocation4 + $0x38] sm:$0xff] %vm36_vm0, %v920_v50 }
  0x1c   :  { %853 = vmatmul.msk.bf16.vlgmr.msrb.gmra.mxu1 %vm36_vm0, %v50_v23 }
  0x1d   :  { %855 = vmatmul.msk.bf16.vlgmr.msrb.gmra.mxu3 %vm36_vm0, %v52_v22 }
  0x87   :  { %v1005_v24 = vpop.f32.mrf.mxu0 }
  0x88   :  { %v222_v25 = vsel %vm36_vm0, %v1005_v24, -inf }
  0x89   :  { %223 = vmax.xlane.f32.xlu1 %v222_v25  ;;  %v1011_v27 = vpop.f32.mrf.mxu1 }
  0x8a   :  { %v225_v31 = vsel %vm36_vm0, %v1011_v27, -inf }
  0x8d   :  { %v1016_v28 = vpop.f32.mrf.mxu2 }
  0x8e   :  { %v228_v30 = vsel %vm36_vm0, %v1016_v28, -inf }
  0x8f   :  { %229 = vmax.xlane.f32.xlu0 %v228_v30  ;;  %v79_v32 = vpop.f32.mrf.mxu0 }
  0x90   :  { %v1019_v29 = vpop.f32.mrf.mxu3 }
  0x91   :  { %226 = vmax.xlane.f32.xlu1 %v225_v31  ;;  %v98_v33 = vpop.f32.mrf.mxu1  ;;  %v231_v34 = vsel %vm36_vm0, %v1019_v29, -inf }
  0x95   :  { %v117_v35 = vpop.f32.mrf.mxu2 }
  0x96   :  { %v465_v35 = vld [vmem:[%s1249_s2 + $0x8] sm:$0xf] }
  0x97   :  { %232 = vmax.xlane.f32.xlu0 %v231_v34  ;;  %v1029_v37 = vpop.f32.mrf.mxu0 }
  0x98   :  { %v136_v36 = vpop.f32.mrf.mxu3  ;;  %v234_v40 = vsel %vm36_vm0, %v1029_v37, -inf }
  0x99   :  { %v1031_v38 = vpop.f32.mrf.mxu1  ;;  %v514_v36 = vsel %vm474_vm2, %v465_v35, 0 }
  0x9a   :  { %v237_v39 = vsel %vm36_vm0, %v1031_v38, -inf  ;;  %523 = vmatpush.bf16.msra.mxu2 %v514_v36 }
  0x9b   :  { %238 = vmax.xlane.f32.xlu1 %v237_v39  ;;  %v464_v39 = vld [vmem:[%s1249_s2 + $0x4] sm:$0xf] }
  0x9d   :  { %v1037_v41 = vpop.f32.mrf.mxu2 }
  0x9e   :  { %v240_v43 = vsel %vm36_vm0, %v1037_v41, -inf }
  0x9f   :  { %241 = vmax.xlane.f32.xlu2 %v240_v43  ;;  %235 = vmax.xlane.f32.xlu0 %v234_v40  ;;  %v155_v44 = vpop.f32.mrf.mxu0  ;;  %v495_v40 = vsel %vm474_vm2, %v464_v39, 0  ;;  %v469_v43 = vld [vmem:[%s1249_s2 + $0x18] sm:$0xf] }
  0xa0   :  { %v1039_v42 = vpop.f32.mrf.mxu3  ;;  %504 = vmatpush.bf16.msra.mxu1 %v495_v40  ;;  %v590_v44 = vsel %vm474_vm2, %v469_v43, 0 }
  0xa1   :  { %v174_v45 = vpop.f32.mrf.mxu1  ;;  %v243_v46 = vsel %vm36_vm0, %v1039_v42, -inf  ;;  %599 = vmatpush.bf16.msrb.mxu2 %v590_v44 }
  0xa2   :  { %v463_v45 = vld [vmem:[%s1249_s2] sm:$0xf] }
  0xa5   :  { %v193_v47 = vpop.f32.mrf.mxu2 }
  0xa7   :  { %244 = vmax.xlane.f32.xlu2 %v243_v46  ;;  %v476_v46 = vsel %vm474_vm2, %v463_v45, 0 }
  0xa8   :  { %v212_v48 = vpop.f32.mrf.mxu3  ;;  %485 = vmatpush.bf16.msra.mxu0 %v476_v46 }
  0xfc   :  { %v224_v52 = vpop.xlane.xlu1 %223 }
  0xfd   :  { %v246_v53 = vmax.f32 %v214_v51, %v224_v52  ;;  %v466_v52 = vld [vmem:[%s1249_s2 + $0xc] sm:$0xf] }
  0xff   :  { %640 = vst.msk [vmem:[#allocation2] sm:$0xff] %vm19_vm1, %v246_v53  ;;  %280 = vperm.xlu1 %869, %v246_v53   ;;  %v254_v21 = vsub.f32 %v214_v51, %v246_v53 }
 0x101   :  { %v262_v26 = vmul.f32 1.442695, %v254_v21 }
 0x102   :  { %v230_v55 = vpop.xlane.xlu0 %229 }
 0x103   :  { %v248_v57 = vmax.f32 %v216_v54, %v230_v55  ;;  %v533_v55 = vsel %vm474_vm2, %v466_v52, 0 }
 0x104   :  { %v227_v58 = vpop.xlane.xlu1 %226  ;;  %542 = vmatpush.bf16.msra.mxu3 %v533_v55 }
 0x105   :  { %642 = vst.msk [vmem:[#allocation2 + $0x10] sm:$0xff] %vm19_vm1, %v248_v57  ;;  %290 = vperm.xlu2 %867, %v248_v57   ;;  %v247_v59 = vmax.f32 %v215_v56, %v227_v58  ;;  %v256_v60 = vsub.f32 %v216_v54, %v248_v57 }
 0x107   :  { %641 = vst.msk [vmem:[#allocation2 + $0x8] sm:$0xff] %vm19_vm1, %v247_v59  ;;  %v266_v62 = vmul.f32 1.442695, %v256_v60  ;;  %v255_v11 = vsub.f32 %v215_v56, %v247_v59 }
 0x109   :  { %870 = vpow2.f32 %v266_v62  ;;  %v264_v15 = vmul.f32 1.442695, %v255_v11 }
 0x10a   :  { %v233_v63 = vpop.xlane.xlu0 %232 }
 0x10b   :  { %v249_v0 = vmax.f32 %v217_v61, %v233_v63 }
 0x10d   :  { %643 = vst.msk [vmem:[#allocation2 + $0x18] sm:$0xff] %vm19_vm1, %v249_v0  ;;  %285 = vperm.xlu2 %867, %v247_v59   ;;  %295 = vperm.xlu0 %868, %v249_v0   ;;  %v257_v30 = vsub.f32 %v217_v61, %v249_v0 }
 0x10e   :  { %v239_v2 = vpop.xlane.xlu1 %238 }
 0x10f   :  { %v251_v5 = vmax.f32 %v219_v1, %v239_v2  ;;  %v1071_v10 = vpop.eup %870  ;;  %v268_v32 = vmul.f32 1.442695, %v257_v30 }
 0x111   :  { %645 = vst.msk [vmem:[#allocation2 + $0x28] sm:$0xff] %vm19_vm1, %v251_v5  ;;  %v259_v19 = vsub.f32 %v219_v1, %v251_v5 }
 0x112   :  { %v242_v6 = vpop.xlane.xlu2 %241  ;;  %v236_v7 = vpop.xlane.xlu0 %235 }
 0x113   :  { %v1069_v8 = vmax.f32 %v1065_v3, %v242_v6  ;;  %v250_v9 = vmax.f32 %v218_v4, %v236_v7  ;;  %v272_v23 = vmul.f32 1.442695, %v259_v19 }
 0x115   :  { %v260_v12 = vsub.f32 %v1065_v3, %v1069_v8  ;;  %646 = vst.msk [vmem:[#allocation2 + $0x30] sm:$0xff] %vm19_vm1, %v1069_v8  ;;  %v258_v13 = vsub.f32 %v218_v4, %v250_v9  ;;  %310 = vperm.xlu2 %867, %v1069_v8   ;;  %419 = vperm.xlu0 %868, %v1071_v10  }
 0x116   :  { %644 = vst.msk [vmem:[#allocation2 + $0x20] sm:$0xff] %vm19_vm1, %v250_v9 }
 0x117   :  { %v270_v14 = vmul.f32 1.442695, %v258_v13 }
 0x119   :  { %872 = vpow2.f32 %v270_v14 }
 0x11a   :  { %v245_v17 = vpop.xlane.xlu2 %244  ;;  %874 = vpow2.f32 %v264_v15 }
 0x11b   :  { %v1083_v18 = vmax.f32 %v1080_v16, %v245_v17  ;;  %876 = vpow2.f32 %v272_v23  ;;  %v468_v17 = vld [vmem:[%s1249_s2 + $0x14] sm:$0xf] }
 0x11c   :  { %878 = vpow2.f32 %v262_v26  ;;  %v571_v23 = vsel %vm474_vm2, %v468_v17, 0 }
 0x11d   :  { %v261_v20 = vsub.f32 %v1080_v16, %v1083_v18  ;;  %647 = vst.msk [vmem:[#allocation2 + $0x38] sm:$0xff] %vm19_vm1, %v1083_v18  ;;  %315 = vperm.xlu1 %869, %v1083_v18   ;;  %300 = vperm.xlu2 %867, %v250_v9   ;;  %880 = vpow2.f32 %v268_v32  ;;  %v349_v18 = vld [vmem:[#allocation3 + $0x38] sm:$0xff] }
 0x11e   :  { %580 = vmatpush.bf16.msrb.mxu1 %v571_v23 }
 0x11f   :  { %v1090_v22 = vpop.eup %872  ;;  %v276_v8 = vmul.f32 1.442695, %v261_v20  ;;  %v402_v20 = vld [vmem:[#allocation4 + $0x18] sm:$0xff] }
 0x120   :  { %429 = vperm.xlu0 %868, %v1090_v22   ;;  %v1093_v25 = vpop.eup %874 }
 0x121   :  { %v1096_v31 = vpop.eup %876 }
 0x122   :  { %v1098_v33 = vpop.eup %878 }
 0x123   :  { %v1102_v34 = vpop.eup %880 }
 0x125   :  { %305 = vperm.xlu1 %869, %v251_v5   ;;  %414 = vperm.xlu2 %867, %v1093_v25  }
 0x12d   :  { %409 = vperm.xlu1 %869, %v1098_v33   ;;  %434 = vperm.xlu2 %867, %v1096_v31  }
 0x135   :  { %424 = vperm.xlu1 %869, %v1102_v34  }
 0x15f   :  { %v291_v47 = vpop.permute.xlu2 %290 }
 0x160   :  { %v320_v48 = vsub.f32 %v1016_v28, %v291_v47  ;;  %v467_v28 = vld [vmem:[%s1249_s2 + $0x10] sm:$0xf] }
 0x162   :  { %v330_v49 = vmul.f32 1.442695, %v320_v48 }
 0x164   :  { %882 = vpow2.f32 %v330_v49 }
 0x167   :  { %v286_v50 = vpop.permute.xlu2 %285 }
 0x168   :  { %v319_v51 = vsub.f32 %v1011_v27, %v286_v50  ;;  %v552_v27 = vsel %vm474_vm2, %v467_v28, 0 }
 0x169   :  { %561 = vmatpush.bf16.msrb.mxu0 %v552_v27 }
 0x16a   :  { %v883_v53 = vpop.eup %882  ;;  %v328_v54 = vmul.f32 1.442695, %v319_v51 }
 0x16b   :  { %v457_v56 = vpack.c.bf16 %v883_v53, %v883_v53  ;;  %v364_v57 = vsel %vm36_vm0, %v883_v53, 0.0 }
 0x16c   :  { %884 = vpow2.f32 %v328_v54  ;;  %365 = vadd.xlane.f32.xlu1 %v364_v57 }
 0x16d   :  { %858 = vmatmul.msk.bf16.vlgmr.msra.gmra.mxu2 %vm36_vm0, %v457_v56 }
 0x16f   :  { %v311_v58 = vpop.permute.xlu2 %310 }
 0x170   :  { %v324_v59 = vsub.f32 %v1037_v41, %v311_v58  ;;  %v470_v41 = vld [vmem:[%s1249_s2 + $0x1c] sm:$0xf]  ;;  %v343_v58 = vld [vmem:[#allocation3 + $0x8] sm:$0xff] }
 0x171   :  { %v281_v60 = vpop.permute.xlu1 %280 }
 0x172   :  { %v885_v61 = vpop.eup %884  ;;  %v338_v62 = vmul.f32 1.442695, %v324_v59  ;;  %v318_v63 = vsub.f32 %v1005_v24, %v281_v60  ;;  %v609_v24 = vsel %vm474_vm2, %v470_v41, 0  ;;  %v351_v59 = vmul.f32 %v1093_v25, %v343_v58 }
 0x173   :  { %v456_v0 = vpack.c.bf16 %v885_v61, %v885_v61  ;;  %v361_v1 = vsel %vm36_vm0, %v885_v61, 0.0  ;;  %618 = vmatpush.bf16.msrb.mxu3 %v609_v24 }
 0x174   :  { %886 = vpow2.f32 %v338_v62  ;;  %v326_v2 = vmul.f32 1.442695, %v318_v63  ;;  %362 = vadd.xlane.f32.xlu2 %v361_v1  ;;  %v342_v1 = vld [vmem:[#allocation3] sm:$0xff] }
 0x175   :  { %857 = vmatmul.msk.bf16.vlgmr.msra.gmra.mxu1 %vm36_vm0, %v456_v0  ;;  %v401_v0 = vld [vmem:[#allocation4 + $0x10] sm:$0xff] }
 0x176   :  { %888 = vpow2.f32 %v326_v2 }
 0x177   :  { %v301_v4 = vpop.permute.xlu2 %300 }
 0x178   :  { %v322_v5 = vsub.f32 %v1029_v37, %v301_v4 }
 0x17a   :  { %v887_v6 = vpop.eup %886  ;;  %v334_v7 = vmul.f32 1.442695, %v322_v5  ;;  %v350_v5 = vmul.f32 %v1098_v33, %v342_v1  ;;  %v274_v33 = vmul.f32 1.442695, %v260_v12 }
 0x17b   :  { %v461_v9 = vpack.c.bf16 %v887_v6, %v887_v6  ;;  %v376_v43 = vsel %vm36_vm0, %v887_v6, 0.0 }
 0x17c   :  { %v889_v11 = vpop.eup %888  ;;  %890 = vpow2.f32 %v334_v7 }
 0x17d   :  { %v455_v13 = vpack.c.bf16 %v889_v11, %v889_v11  ;;  %862 = vmatmul.msk.bf16.vlgmr.msrb.gmra.mxu2 %vm36_vm0, %v461_v9  ;;  %v358_v14 = vsel %vm36_vm0, %v889_v11, 0.0 }
 0x17e   :  { %359 = vadd.xlane.f32.xlu0 %v358_v14  ;;  %v399_v14 = vld [vmem:[#allocation4] sm:$0xff] }
 0x17f   :  { %856 = vmatmul.msk.bf16.vlgmr.msra.gmra.mxu0 %vm36_vm0, %v455_v13  ;;  %v296_v37 = vpop.permute.xlu0 %295  ;;  %v415_v53 = vpop.permute.xlu2 %414  ;;  %v346_v13 = vld [vmem:[#allocation3 + $0x20] sm:$0xff] }
 0x180   :  { %v321_v15 = vsub.f32 %v1019_v29, %v296_v37 }
 0x182   :  { %v891_v19 = vpop.eup %890  ;;  %v332_v21 = vmul.f32 1.442695, %v321_v15  ;;  %v354_v15 = vmul.f32 %v1090_v22, %v346_v13 }
 0x183   :  { %v370_v26 = vsel %vm36_vm0, %v891_v19, 0.0  ;;  %v459_v36 = vpack.c.bf16 %v891_v19, %v891_v19 }
 0x184   :  { %892 = vpow2.f32 %v332_v21 }
 0x186   :  { %371 = vadd.xlane.f32.xlu0 %v370_v26 }
 0x187   :  { %v1164_v56 = vpop.permute.xlu2 %434  ;;  %v420_v27 = vpop.permute.xlu0 %419 }
 0x188   :  { %v449_v2 = vmul.f32 %v420_v27, %v401_v0  ;;  %v347_v27 = vld [vmem:[#allocation3 + $0x28] sm:$0xff] }
 0x18a   :  { %v893_v30 = vpop.eup %892 }
 0x18b   :  { %v458_v32 = vpack.c.bf16 %v893_v30, %v893_v30  ;;  %v367_v35 = vsel %vm36_vm0, %v893_v30, 0.0  ;;  %v345_v30 = vld [vmem:[#allocation3 + $0x18] sm:$0xff] }
 0x18c   :  { %368 = vadd.xlane.f32.xlu2 %v367_v35 }
 0x18d   :  { %859 = vmatmul.msk.bf16.vlgmr.msra.gmra.mxu3 %vm36_vm0, %v458_v32 }
 0x18f   :  { %v316_v29 = vpop.permute.xlu1 %315  ;;  %860 = vmatmul.msk.bf16.vlgmr.msrb.gmra.mxu0 %vm36_vm0, %v459_v36  ;;  %v353_v36 = vmul.f32 %v1102_v34, %v345_v30 }
 0x190   :  { %v325_v39 = vsub.f32 %v1039_v42, %v316_v29 }
 0x192   :  { %v340_v40 = vmul.f32 1.442695, %v325_v39  ;;  %v430_v62 = vpop.permute.xlu0 %429 }
 0x194   :  { %894 = vpow2.f32 %v340_v40  ;;  %377 = vadd.xlane.f32.xlu2 %v376_v43  ;;  %v348_v40 = vld [vmem:[#allocation3 + $0x30] sm:$0xff] }
 0x197   :  { %v306_v44 = vpop.permute.xlu1 %305 }
 0x198   :  { %v323_v45 = vsub.f32 %v1031_v38, %v306_v44  ;;  %v344_v38 = vld [vmem:[#allocation3 + $0x10] sm:$0xff] }
 0x199   :  { %v352_v55 = vmul.f32 %v1071_v10, %v344_v38  ;;  %v400_v10 = vld [vmem:[#allocation4 + $0x8] sm:$0xff] }
 0x19a   :  { %v895_v46 = vpop.eup %894  ;;  %v336_v47 = vmul.f32 1.442695, %v323_v45  ;;  %v448_v41 = vmul.f32 %v415_v53, %v400_v10  ;;  %v403_v45 = vld [vmem:[#allocation4 + $0x20] sm:$0xff] }
 0x19b   :  { %v462_v48 = vpack.c.bf16 %v895_v46, %v895_v46  ;;  %v379_v49 = vsel %vm36_vm0, %v895_v46, 0.0  ;;  %v451_v16 = vmul.f32 %v430_v62, %v403_v45 }
 0x19c   :  { %896 = vpow2.f32 %v336_v47  ;;  %380 = vadd.xlane.f32.xlu0 %v379_v49 }
 0x19d   :  { %863 = vmatmul.msk.bf16.vlgmr.msrb.gmra.mxu3 %vm36_vm0, %v462_v48  ;;  %898 = vpow2.f32 %v274_v33 }
 0x19e   :  { %900 = vpow2.f32 %v276_v8 }
 0x19f   :  { %v410_v52 = vpop.permute.xlu1 %409 }
 0x1a0   :  { %v447_v23 = vmul.f32 %v410_v52, %v399_v14 }
 0x1a2   :  { %v897_v50 = vpop.eup %896 }
 0x1a3   :  { %v460_v51 = vpack.c.bf16 %v897_v50, %v897_v50  ;;  %v373_v42 = vsel %vm36_vm0, %v897_v50, 0.0  ;;  %v899_v12 = vpop.eup %898 }
 0x1a4   :  { %374 = vadd.xlane.f32.xlu1 %v373_v42  ;;  %v356_v44 = vmul.f32 %v899_v12, %v348_v40  ;;  %v901_v49 = vpop.eup %900 }
 0x1a5   :  { %861 = vmatmul.msk.bf16.vlgmr.msrb.gmra.mxu1 %vm36_vm0, %v460_v51  ;;  %v357_v42 = vmul.f32 %v901_v49, %v349_v18 }
 0x1a7   :  { %v1161_v54 = vpop.permute.xlu1 %424 }
 0x1a8   :  { %v450_v52 = vmul.f32 %v1161_v54, %v402_v20 }
 0x1df   :  { %v366_v57 = vpop.xlane.xlu1 %365 }
 0x1e0   :  { %v384_v28 = vadd.f32 %v366_v57, %v352_v55 }
 0x1e2   :  { %393 = vst.msk [vmem:[#allocation3 + $0x10] sm:$0xff] %vm19_vm1, %v384_v28 }
 0x1e7   :  { %v363_v60 = vpop.xlane.xlu2 %362 }
 0x1e8   :  { %v383_v61 = vadd.f32 %v363_v60, %v351_v59  ;;  %v355_v59 = vmul.f32 %v1096_v31, %v347_v27 }
 0x1e9   :  { %v661_v63 = vld [vmem:[#allocation3 + $0x10] sm:$0xff] }
 0x1ea   :  { %392 = vst.msk [vmem:[#allocation3 + $0x8] sm:$0xff] %vm19_vm1, %v383_v61  ;;  %679 = vperm.xlu2 %867, %v661_v63   ;;  %v404_v63 = vld [vmem:[#allocation4 + $0x28] sm:$0xff] }
 0x1eb   :  { %v452_v1 = vmul.f32 %v1164_v56, %v404_v63 }
 0x1f0   :  { %v525_v4 = vpop.f32.mrf.mxu2 }
 0x1f1   :  { %v626_v6 = vadd.f32 %v525_v4, %v449_v2  ;;  %v360_v7 = vpop.xlane.xlu0 %359  ;;  %v660_v24 = vld [vmem:[#allocation3 + $0x8] sm:$0xff] }
 0x1f2   :  { %v382_v9 = vadd.f32 %v360_v7, %v350_v5  ;;  %v506_v25 = vpop.f32.mrf.mxu1  ;;  %674 = vperm.xlu0 %868, %v660_v24  }
 0x1f3   :  { %634 = vst.msk [vmem:[#allocation4 + $0x10] sm:$0xff] %vm36_vm0, %v626_v6  ;;  %v625_v11 = vadd.f32 %v506_v25, %v448_v41 }
 0x1f4   :  { %391 = vst.msk [vmem:[#allocation3] sm:$0xff] %vm19_vm1, %v382_v9 }
 0x1f5   :  { %633 = vst.msk [vmem:[#allocation4 + $0x8] sm:$0xff] %vm36_vm0, %v625_v11 }
 0x1f8   :  { %v527_v37 = vpop.f32.mrf.mxu2 }
 0x1f9   :  { %v372_v17 = vpop.xlane.xlu0 %371 }
 0x1fa   :  { %v386_v19 = vadd.f32 %v372_v17, %v354_v15  ;;  %v508_v21 = vpop.f32.mrf.mxu1  ;;  %v653_v37 = vld [vmem:[#allocation4 + $0x10] sm:$0xff] }
 0x1fb   :  { %v659_v26 = vld [vmem:[#allocation3] sm:$0xff] }
 0x1fc   :  { %395 = vst.msk [vmem:[#allocation3 + $0x20] sm:$0xff] %vm19_vm1, %v386_v19  ;;  %669 = vperm.xlu1 %869, %v659_v26   ;;  %v487_v32 = vpop.f32.mrf.mxu0 }
 0x1fd   :  { %v624_v35 = vadd.f32 %v487_v32, %v447_v23 }
 0x1ff   :  { %632 = vst.msk [vmem:[#allocation4] sm:$0xff] %vm36_vm0, %v624_v35  ;;  %v369_v22 = vpop.xlane.xlu2 %368 }
 0x200   :  { %v385_v29 = vadd.f32 %v369_v22, %v353_v36  ;;  %v1180_v3 = vpop.f32.mrf.mxu2 }
 0x202   :  { %394 = vst.msk [vmem:[#allocation3 + $0x18] sm:$0xff] %vm19_vm1, %v385_v29 }
 0x203   :  { %v663_v39 = vld [vmem:[#allocation3 + $0x20] sm:$0xff] }
 0x204   :  { %689 = vperm.xlu0 %868, %v663_v39   ;;  %v489_v43 = vpop.f32.mrf.mxu0  ;;  %v652_v39 = vld [vmem:[#allocation4 + $0x8] sm:$0xff] }
 0x207   :  { %v378_v34 = vpop.xlane.xlu2 %377 }
 0x208   :  { %v388_v46 = vadd.f32 %v378_v34, %v356_v44  ;;  %v603_v47 = vpop.f32.mrf.mxu2 }
 0x209   :  { %v662_v48 = vld [vmem:[#allocation3 + $0x18] sm:$0xff] }
 0x20a   :  { %397 = vst.msk [vmem:[#allocation3 + $0x30] sm:$0xff] %vm19_vm1, %v388_v46  ;;  %684 = vperm.xlu1 %869, %v662_v48  }
 0x20c   :  { %v563_v50 = vpop.f32.mrf.mxu0 }
 0x20d   :  { %v628_v51 = vadd.f32 %v563_v50, %v451_v16 }
 0x20f   :  { %636 = vst.msk [vmem:[#allocation4 + $0x20] sm:$0xff] %vm36_vm0, %v628_v51  ;;  %v381_v53 = vpop.xlane.xlu0 %380 }
 0x210   :  { %v389_v38 = vadd.f32 %v381_v53, %v357_v42  ;;  %v544_v55 = vpop.f32.mrf.mxu3  ;;  %v651_v53 = vld [vmem:[#allocation4] sm:$0xff] }
 0x211   :  { %v627_v57 = vadd.f32 %v544_v55, %v450_v52  ;;  %v665_v28 = vld [vmem:[#allocation3 + $0x30] sm:$0xff] }
 0x212   :  { %398 = vst.msk [vmem:[#allocation3 + $0x38] sm:$0xff] %vm19_vm1, %v389_v38  ;;  %699 = vperm.xlu1 %869, %v665_v28  }
 0x213   :  { %635 = vst.msk [vmem:[#allocation4 + $0x18] sm:$0xff] %vm36_vm0, %v627_v57 }
 0x214   :  { %v565_v58 = vpop.f32.mrf.mxu0 }
 0x217   :  { %v375_v60 = vpop.xlane.xlu1 %374 }
 0x218   :  { %v387_v61 = vadd.f32 %v375_v60, %v355_v59  ;;  %v546_v62 = vpop.f32.mrf.mxu3  ;;  %v405_v60 = vld [vmem:[#allocation4 + $0x30] sm:$0xff] }
 0x219   :  { %v666_v54 = vld [vmem:[#allocation3 + $0x38] sm:$0xff] }
 0x21a   :  { %396 = vst.msk [vmem:[#allocation3 + $0x28] sm:$0xff] %vm19_vm1, %v387_v61  ;;  %444 = vperm.xlu1 %869, %v901_v49   ;;  %704 = vperm.xlu0 %868, %v666_v54  }
 0x220   :  { %v1193_v0 = vpop.f32.mrf.mxu3 }
 0x221   :  { %v664_v10 = vld [vmem:[#allocation3 + $0x28] sm:$0xff] }
 0x222   :  { %v582_v2 = vpop.f32.mrf.mxu1  ;;  %694 = vperm.xlu2 %867, %v664_v10  }
 0x223   :  { %v629_v4 = vadd.f32 %v582_v2, %v452_v1 }
 0x225   :  { %637 = vst.msk [vmem:[#allocation4 + $0x28] sm:$0xff] %vm36_vm0, %v629_v4 }
 0x228   :  { %v622_v31 = vpop.f32.mrf.mxu3 }
 0x22a   :  { %v584_v5 = vpop.f32.mrf.mxu1  ;;  %439 = vperm.xlu2 %867, %v899_v12  }
 0x244   :  { %v680_v41 = vpop.permute.xlu2 %679 }
 0x245   :  { %902 = vrcp.f32 %v680_v41  ;;  %v748_v9 = vand.u32 2147483648, %v680_v41  ;;  %v746_v11 = vand.u32 2147483647, %v680_v41  ;;  %vm742_vm4 = vweird.f32 %v680_v41 }
 0x247   :  { %v749_v56 = vor.u32 1.1754944e-38, %v748_v9  ;;  %vm747_vm6 = vcmp.eq.f32.partialorder %v746_v11, 8.507059e+37 }
 0x24b   :  { %v903_v6 = vpop.eup %902 }
 0x24c   :  { %v738_v7 = vmul.f32 %v903_v6, %v680_v41  ;;  %vm743_vm3 = vweird.f32 %v903_v6 }
 0x24d   :  { %vm744_vm5 = vmor %vm742_vm4, %vm743_vm3 }
 0x24e   :  { %v739_v24 = vsub.f32 1.0, %v738_v7 }
 0x250   :  { %v740_v25 = vmul.f32 %v903_v6, %v739_v24  ;;  %v655_v24 = vld [vmem:[#allocation4 + $0x20] sm:$0xff] }
 0x252   :  { %v741_v13 = vadd.f32 %v903_v6, %v740_v25 }
 0x254   :  { %v745_v14 = vsel %vm744_vm5, %v903_v6, %v741_v13 }
 0x255   :  { %v750_v15 = vsel %vm747_vm6, %v749_v56, %v745_v14 }
 0x256   :  { %v751_v33 = vmul.f32 %v750_v15, %v653_v37 }
 0x258   :  { %v829_v17 = vpack.c.bf16 %v751_v33, %v751_v33 }
 0x25a   :  { %838 = vst.msk [vmem:[%s1250_s3 + $0x8] sm:$0xf] %vm835_vm7, %v829_v17 }
 0x264   :  { %v675_v19 = vpop.permute.xlu0 %674 }
 0x265   :  { %904 = vrcp.f32 %v675_v19  ;;  %v733_v32 = vand.u32 2147483648, %v675_v19  ;;  %v731_v36 = vand.u32 2147483647, %v675_v19  ;;  %vm727_vm9 = vweird.f32 %v675_v19 }
 0x267   :  { %v734_v29 = vor.u32 1.1754944e-38, %v733_v32  ;;  %vm732_vm11 = vcmp.eq.f32.partialorder %v731_v36, 8.507059e+37 }
 0x26b   :  { %v905_v21 = vpop.eup %904 }
 0x26c   :  { %v723_v23 = vmul.f32 %v905_v21, %v675_v19  ;;  %vm728_vm8 = vweird.f32 %v905_v21  ;;  %v406_v19 = vld [vmem:[#allocation4 + $0x38] sm:$0xff] }
 0x26d   :  { %vm729_vm10 = vmor %vm727_vm9, %vm728_vm8 }
 0x26e   :  { %v724_v26 = vsub.f32 1.0, %v723_v23  ;;  %v670_v30 = vpop.permute.xlu1 %669 }
 0x26f   :  { %906 = vrcp.f32 %v670_v30  ;;  %v718_v47 = vand.u32 2147483648, %v670_v30  ;;  %v716_v49 = vand.u32 2147483647, %v670_v30  ;;  %vm712_vm13 = vweird.f32 %v670_v30 }
 0x270   :  { %v725_v35 = vmul.f32 %v905_v21, %v724_v26 }
 0x271   :  { %v719_v51 = vor.u32 1.1754944e-38, %v718_v47  ;;  %vm717_vm15 = vcmp.eq.f32.partialorder %v716_v49, 8.507059e+37 }
 0x272   :  { %v726_v22 = vadd.f32 %v905_v21, %v725_v35 }
 0x274   :  { %v730_v8 = vsel %vm729_vm10, %v905_v21, %v726_v22  ;;  %v656_v22 = vld [vmem:[#allocation4 + $0x28] sm:$0xff] }
 0x275   :  { %v907_v12 = vpop.eup %906  ;;  %v735_v40 = vsel %vm732_vm11, %v734_v29, %v730_v8 }
 0x276   :  { %v736_v43 = vmul.f32 %v735_v40, %v652_v39  ;;  %v708_v44 = vmul.f32 %v907_v12, %v670_v30  ;;  %v690_v34 = vpop.permute.xlu0 %689  ;;  %vm713_vm12 = vweird.f32 %v907_v12  ;;  %v654_v40 = vld [vmem:[#allocation4 + $0x18] sm:$0xff] }
 0x277   :  { %908 = vrcp.f32 %v690_v34  ;;  %vm714_vm14 = vmor %vm712_vm13, %vm713_vm12  ;;  %v776_v28 = vand.u32 2147483647, %v690_v34  ;;  %v778_v27 = vand.u32 2147483648, %v690_v34  ;;  %vm772_vm2 = vweird.f32 %v690_v34 }
 0x278   :  { %v828_v45 = vpack.c.bf16 %v736_v43, %v736_v43  ;;  %v709_v46 = vsub.f32 1.0, %v708_v44 }
 0x279   :  { %vm777_vm3 = vcmp.eq.f32.partialorder %v776_v28, 8.507059e+37  ;;  %v779_v2 = vor.u32 1.1754944e-38, %v778_v27 }
 0x27a   :  { %837 = vst.msk [vmem:[%s1250_s3 + $0x4] sm:$0xf] %vm835_vm7, %v828_v45  ;;  %v710_v48 = vmul.f32 %v907_v12, %v709_v46 }
 0x27c   :  { %v711_v16 = vadd.f32 %v907_v12, %v710_v48  ;;  %v695_v18 = vpop.permute.xlu2 %694  ;;  %v1205_v20 = vpop.permute.xlu1 %684 }
 0x27d   :  { %v909_v50 = vpop.eup %908  ;;  %910 = vrcp.f32 %v695_v18  ;;  %v791_v6 = vand.u32 2147483647, %v695_v18  ;;  %v793_v7 = vand.u32 2147483648, %v695_v18  ;;  %v761_v11 = vand.u32 2147483647, %v1205_v20 }
 0x27e   :  { %v715_v42 = vsel %vm714_vm14, %v907_v12, %v711_v16  ;;  %v768_v52 = vmul.f32 %v909_v50, %v690_v34  ;;  %912 = vrcp.f32 %v1205_v20  ;;  %vm773_vm1 = vweird.f32 %v909_v50 }
 0x27f   :  { %v720_v38 = vsel %vm717_vm15, %v719_v51, %v715_v42  ;;  %vm774_vm4 = vmor %vm772_vm2, %vm773_vm1  ;;  %v763_v37 = vand.u32 2147483648, %v1205_v20  ;;  %vm787_vm8 = vweird.f32 %v695_v18  ;;  %vm792_vm10 = vcmp.eq.f32.partialorder %v791_v6, 8.507059e+37 }
 0x280   :  { %v721_v55 = vmul.f32 %v720_v38, %v651_v53  ;;  %v769_v57 = vsub.f32 1.0, %v768_v52  ;;  %v794_v23 = vor.u32 1.1754944e-38, %v793_v7  ;;  %vm757_vm11 = vweird.f32 %v1205_v20 }
 0x281   :  { %vm762_vm13 = vcmp.eq.f32.partialorder %v761_v11, 8.507059e+37  ;;  %v764_v30 = vor.u32 1.1754944e-38, %v763_v37 }
 0x282   :  { %v827_v58 = vpack.c.bf16 %v721_v55, %v721_v55  ;;  %v770_v59 = vmul.f32 %v909_v50, %v769_v57 }
 0x283   :  { %v911_v61 = vpop.eup %910 }
 0x284   :  { %v913_v62 = vpop.eup %912  ;;  %836 = vst.msk [vmem:[%s1250_s3] sm:$0xf] %vm835_vm7, %v827_v58  ;;  %v771_v54 = vadd.f32 %v909_v50, %v770_v59  ;;  %v783_v63 = vmul.f32 %v911_v61, %v695_v18  ;;  %v440_v1 = vpop.permute.xlu2 %439  ;;  %vm788_vm5 = vweird.f32 %v911_v61 }
 0x285   :  { %v1212_v10 = vpop.permute.xlu1 %699  ;;  %v753_v4 = vmul.f32 %v913_v62, %v1205_v20  ;;  %v453_v31 = vmul.f32 %v440_v1, %v405_v60  ;;  %vm758_vm6 = vweird.f32 %v913_v62  ;;  %vm789_vm9 = vmor %vm787_vm8, %vm788_vm5 }
 0x286   :  { %914 = vrcp.f32 %v1212_v10  ;;  %v775_v5 = vsel %vm774_vm4, %v909_v50, %v771_v54  ;;  %v784_v41 = vsub.f32 1.0, %v783_v63  ;;  %vm759_vm12 = vmor %vm757_vm11, %vm758_vm6  ;;  %v808_v45 = vand.u32 2147483648, %v1212_v10 }
 0x287   :  { %v780_v9 = vsel %vm777_vm3, %v779_v2, %v775_v5  ;;  %v754_v25 = vsub.f32 1.0, %v753_v4  ;;  %v630_v13 = vadd.f32 %v1180_v3, %v453_v31  ;;  %v806_v49 = vand.u32 2147483647, %v1212_v10 }
 0x288   :  { %v781_v56 = vmul.f32 %v780_v9, %v655_v24  ;;  %v785_v14 = vmul.f32 %v911_v61, %v784_v41  ;;  %vm802_vm15 = vweird.f32 %v1212_v10 }
 0x289   :  { %v755_v15 = vmul.f32 %v913_v62, %v754_v25  ;;  %638 = vst.msk [vmem:[#allocation4 + $0x30] sm:$0xff] %vm36_vm0, %v630_v13  ;;  %vm807_vm2 = vcmp.eq.f32.partialorder %v806_v49, 8.507059e+37 }
 0x28a   :  { %v831_v33 = vpack.c.bf16 %v781_v56, %v781_v56  ;;  %v786_v17 = vadd.f32 %v911_v61, %v785_v14 }
 0x28b   :  { %v756_v26 = vadd.f32 %v913_v62, %v755_v15 }
 0x28c   :  { %v915_v21 = vpop.eup %914  ;;  %840 = vst.msk [vmem:[%s1250_s3 + $0x10] sm:$0xf] %vm835_vm7, %v831_v33  ;;  %v790_v3 = vsel %vm789_vm9, %v911_v61, %v786_v17  ;;  %v705_v36 = vpop.permute.xlu0 %704 }
 0x28d   :  { %v798_v32 = vmul.f32 %v915_v21, %v1212_v10  ;;  %v445_v35 = vpop.permute.xlu1 %444  ;;  %v795_v29 = vsel %vm792_vm10, %v794_v23, %v790_v3  ;;  %v760_v8 = vsel %vm759_vm12, %v913_v62, %v756_v26  ;;  %916 = vrcp.f32 %v705_v36 }
 0x28e   :  { %v454_v12 = vmul.f32 %v445_v35, %v406_v19  ;;  %v796_v39 = vmul.f32 %v795_v29, %v656_v22  ;;  %v765_v43 = vsel %vm762_vm13, %v764_v30, %v760_v8  ;;  %vm803_vm14 = vweird.f32 %v915_v21 }
 0x28f   :  { %v799_v44 = vsub.f32 1.0, %v798_v32  ;;  %v766_v34 = vmul.f32 %v765_v43, %v654_v40  ;;  %vm804_vm1 = vmor %vm802_vm15, %vm803_vm14  ;;  %v823_v55 = vand.u32 2147483648, %v705_v36  ;;  %v821_v27 = vand.u32 2147483647, %v705_v36 }
 0x290   :  { %v631_v46 = vadd.f32 %v1193_v0, %v454_v12  ;;  %v832_v47 = vpack.c.bf16 %v796_v39, %v796_v39  ;;  %v809_v0 = vor.u32 1.1754944e-38, %v808_v45  ;;  %v657_v42 = vld [vmem:[#allocation4 + $0x30] sm:$0xff]  ;;  %vm817_vm3 = vweird.f32 %v705_v36 }
 0x291   :  { %v800_v48 = vmul.f32 %v915_v21, %v799_v44  ;;  %v830_v16 = vpack.c.bf16 %v766_v34, %v766_v34  ;;  %v824_v59 = vor.u32 1.1754944e-38, %v823_v55  ;;  %vm822_vm5 = vcmp.eq.f32.partialorder %v821_v27, 8.507059e+37 }
 0x292   :  { %639 = vst.msk [vmem:[#allocation4 + $0x38] sm:$0xff] %vm36_vm0, %v631_v46 }
 0x293   :  { %841 = vst.msk [vmem:[%s1250_s3 + $0x14] sm:$0xf] %vm835_vm7, %v832_v47  ;;  %v801_v18 = vadd.f32 %v915_v21, %v800_v48  ;;  %v917_v20 = vpop.eup %916 }
 0x294   :  { %839 = vst.msk [vmem:[%s1250_s3 + $0xc] sm:$0xf] %vm835_vm7, %v830_v16  ;;  %v813_v51 = vmul.f32 %v917_v20, %v705_v36  ;;  %vm818_vm0 = vweird.f32 %v917_v20 }
 0x295   :  { %v805_v50 = vsel %vm804_vm1, %v915_v21, %v801_v18  ;;  %vm819_vm4 = vmor %vm817_vm3, %vm818_vm0 }
 0x296   :  { %v810_v52 = vsel %vm807_vm2, %v809_v0, %v805_v50  ;;  %v814_v38 = vsub.f32 1.0, %v813_v51 }
 0x297   :  { %v811_v53 = vmul.f32 %v810_v52, %v657_v42 }
 0x298   :  { %v815_v28 = vmul.f32 %v917_v20, %v814_v38 }
 0x299   :  { %v833_v57 = vpack.c.bf16 %v811_v53, %v811_v53  ;;  %v658_v61 = vld [vmem:[#allocation4 + $0x38] sm:$0xff] }
 0x29a   :  { %v816_v58 = vadd.f32 %v917_v20, %v815_v28 }
 0x29b   :  { %842 = vst.msk [vmem:[%s1250_s3 + $0x18] sm:$0xf] %vm835_vm7, %v833_v57 }
 0x29c   :  { %v820_v60 = vsel %vm819_vm4, %v917_v20, %v816_v58 }
 0x29d   :  { %v825_v62 = vsel %vm822_vm5, %v824_v59, %v820_v60 }
 0x29e   :  { %v826_v54 = vmul.f32 %v825_v62, %v658_v61 }
 0x2a0   :  { %v834_v63 = vpack.c.bf16 %v826_v54, %v826_v54 }
 0x2a2   :  { %843 = vst.msk [vmem:[%s1250_s3 + $0x1c] sm:$0xf] %vm835_vm7, %v834_v63 }

// kernel: transformer_block.8
= control target key start
LH: loop header
LB: loop body
LE: loop exit
PB: predicated region body
PF: predicated region fallthrough
CT: control target
= control target key end

     0   :  { %s860_s21 = smov 0   ;;  %s1158_s0 = inlined_call_operand.vmem [shape: f32[8,2,32], index: 0, kind: input, shape index: {}]   ;;  %s1159_s1 = inlined_call_operand.vmem [shape: f32[1,32], index: 1, kind: input, shape index: {}]   ;;  %s1160_s2 = inlined_call_operand.vmem [shape: f32[1,32], index: 2, kind: input, shape index: {}]   ;;  %s1161_s3 = inlined_call_operand.vmem [shape: bf16[32,384], index: 3, kind: input, shape index: {}]   ;;  %s1162_s5 = inlined_call_operand.vmem [shape: bf16[64,192], index: 5, kind: input, shape index: {}]   ;;  %s1163_s6 = inlined_call_operand.vmem [shape: f32[1,192], index: 6, kind: input, shape index: {}]   ;;  %s1164_s7 = inlined_call_operand.vmem [shape: bf16[64,192], index: 7, kind: input, shape index: {}]   ;;  %s1165_s8 = inlined_call_operand.vmem [shape: f32[1,192], index: 8, kind: input, shape index: {}]   ;;  %s1166_s9 = inlined_call_operand.vmem [shape: f32[8,2,64], index: 9, kind: output, shape index: {0}]   ;;  %s1167_s10 = inlined_call_operand.vmem [shape: f32[8,2,64], index: 10, kind: output, shape index: {1}]   ;;  %s1168_s4 = inlined_call_operand.vmem [shape: f32[1,384], index: 4, kind: input, shape index: {}]  }
   0x1   :  { %v788_v0 = vld [vmem:[%s1159_s1] sm:$0x1]  ;;  %v798_v2 = vld [vmem:[%s1161_s3 + $0x4] sm:$0xf]  ;;  %v808_v4 = vld [vmem:[%s1161_s3 + $0x8] sm:$0xf] }
   0x2   :  { %v793_v1 = vld [vmem:[%s1160_s2] sm:$0x1]  ;;  %v813_v5 = vld [vmem:[%s1161_s3 + $0xc] sm:$0xf0]  ;;  %v818_v6 = vld [vmem:[%s1161_s3 + $0x8] sm:$0xf0] }
   0x3   :  { %v803_v3 = vld [vmem:[%s1161_s3] sm:$0xf]  ;;  %v823_v7 = vld [vmem:[%s1161_s3 + $0x10] sm:$0xf0]  ;;  %v828_v8 = vld [vmem:[%s1161_s3 + $0x1c] sm:$0xf] }
   0x4   :  { %v833_v9 = vld [vmem:[%s1161_s3 + $0x18] sm:$0xf]  ;;  %v838_v10 = vld [vmem:[%s1161_s3 + $0x20] sm:$0xf]  ;;  %v843_v11 = vld [vmem:[%s1161_s3 + $0x24] sm:$0xf0] }
   0x5   :  { %v848_v12 = vld [vmem:[%s1161_s3 + $0x20] sm:$0xf0]  ;;  %v853_v13 = vld [vmem:[%s1161_s3 + $0x28] sm:$0xf0]  ;;  %v858_v14 = vld [vmem:[%s1168_s4] sm:$0x7] }
   0x6 LB: > { %s514_s22 = sshll.u32 %s713_s21, 1  ;;  %vm55_vm0 = vcmask 254976   ;;  %v727_v17 = vmov 32.0   ;;  %v530_v29 = vor.u32 %v848_v12, %v833_v9  ;;  %v534_v30 = vor.u32 %v828_v8, %v843_v11  ;;  %s624_s4 = sshll.u32 %s713_s21, 2  ;;  %s713_s21 = sphi %s860_s21, %s51_s21  }
   0x7   : > { %s53_s3 = scalar_lea.vmem %s1158_s0, %s514_s22  ;;  %679 = vrcp.f32 %v727_v17  ;;  %v538_v31 = vor.u32 %v853_v13, %v838_v10  ;;  %v518_v32 = vor.u32 %v818_v6, %v803_v3  ;;  %v522_v33 = vor.u32 %v798_v2, %v813_v5  ;;  %s183_s2 = scalar_lea.vmem [#allocation2], %s624_s4 }
   0x8   : > { %v54_v15 = vld [vmem:[%s53_s3] sm:$0x3]  ;;  %143 = vmatpush.bf16.msra.mxu0 %v530_v29  ;;  %156 = vmatpush.bf16.msra.mxu1 %v534_v30  ;;  %v526_v34 = vor.u32 %v823_v7, %v808_v4  ;;  %v86_v44 = vperm.slane %v788_v0, 0  ;;  %v90_v47 = vperm.slane %v793_v1, 0  ;;  %vm133_vm5 = vcmask 261120   ;;  %s728_s24 = smov 64  }
   0x9   : > { %v56_v16 = vsel %vm55_vm0, %v54_v15, 0.0  ;;  %169 = vmatpush.bf16.msra.mxu2 %v538_v31  ;;  %v96_v51 = vperm.slane %v858_v14, 1  ;;  %v95_v52 = vperm.slane %v858_v14, 0  ;;  %vm179_vm6 = vcmask 1041408   ;;  %s197_s25 = scalar_lea.vmem [#allocation3], %s624_s4  ;;  %s51_s21 = sadd.s32 1, %s713_s21  }
   0xa   : > { %57 = vadd.xlane.f32.xlu0 %v56_v16  ;;  %vm184_vm7 = vcmask 519170   ;;  %v97_v59 = vperm.slane %v858_v14, 2  ;;  %vm193_vm9 = vcmask 523264   ;;  %p48_p0 = scmp.ge.s32.totalorder %s51_s21, 8  }
   0xb   : > { %vm888_vm8 = vmor %vm184_vm7, %vm179_vm6  ;;  %v924_v0 = vld [vmem:[%s1162_s5 + $0x14] sm:$0xf] (%p48_p0)  ;;  %v929_v1 = vld [vmem:[%s1162_s5 + $0x10] sm:$0xf] (%p48_p0)  ;;  %s1075_s20 = smov (%p48_p0), 0  }
   0xc   : > { %144 = vmatpush.bf16.msra.mxu0 %v518_v32  ;;  %157 = vmatpush.bf16.msra.mxu1 %v522_v33  ;;  %v934_v2 = vld [vmem:[%s1162_s5 + $0x18] sm:$0xf0] (%p48_p0)  ;;  %v939_v3 = vld [vmem:[%s1162_s5 + $0x14] sm:$0xf0] (%p48_p0)  ;;  %v944_v4 = vld [vmem:[%s1162_s5 + $0x24] sm:$0xf] (%p48_p0) }
   0xd   : > { %v680_v18 = vpop.eup %679  ;;  %170 = vmatpush.bf16.msra.mxu2 %v526_v34  ;;  %v949_v5 = vld [vmem:[%s1162_s5 + $0x20] sm:$0xf] (%p48_p0)  ;;  %v954_v6 = vld [vmem:[%s1162_s5 + $0x28] sm:$0xf0] (%p48_p0)  ;;  %v959_v7 = vld [vmem:[%s1162_s5 + $0x24] sm:$0xf0] (%p48_p0) }
   0xe   : > { %v60_v19 = vmul.f32 32.0, %v680_v18  ;;  %vm64_vm1 = vweird.f32 %v680_v18  ;;  %v964_v8 = vld [vmem:[%s1162_s5 + $0x34] sm:$0xf] (%p48_p0)  ;;  %v969_v9 = vld [vmem:[%s1162_s5 + $0x30] sm:$0xf] (%p48_p0) }
   0xf   :  { %v974_v10 = vld [vmem:[%s1162_s5 + $0x38] sm:$0xf0] (%p48_p0)  ;;  %v979_v11 = vld [vmem:[%s1162_s5 + $0x34] sm:$0xf0] (%p48_p0)  ;;  %v984_v12 = vld [vmem:[%s1163_s6] sm:$0x3] (%p48_p0) }
  0x10   : > { %v61_v20 = vsub.f32 1.0, %v60_v19  ;;  %v989_v13 = vld [vmem:[%s1164_s7 + $0x4] sm:$0xf] (%p48_p0)  ;;  %v994_v14 = vld [vmem:[%s1164_s7] sm:$0xf] (%p48_p0) }
  0x11   :  { %v1014_v29 = vld [vmem:[%s1164_s7 + $0x10] sm:$0xf] (%p48_p0)  ;;  %v1019_v30 = vld [vmem:[%s1164_s7 + $0x18] sm:$0xf0] (%p48_p0)  ;;  %v1024_v31 = vld [vmem:[%s1164_s7 + $0x14] sm:$0xf0] (%p48_p0) }
  0x12   : > { %v62_v21 = vmul.f32 %v680_v18, %v61_v20  ;;  %v1029_v32 = vld [vmem:[%s1164_s7 + $0x24] sm:$0xf] (%p48_p0)  ;;  %v1034_v33 = vld [vmem:[%s1164_s7 + $0x20] sm:$0xf] (%p48_p0)  ;;  %v1039_v34 = vld [vmem:[%s1164_s7 + $0x28] sm:$0xf0] (%p48_p0) }
  0x14   : > { %v63_v22 = vadd.f32 %v680_v18, %v62_v21 }
  0x16   : > { %v65_v23 = vsel %vm64_vm1, %v680_v18, %v63_v22  ;;  %v904_v22 = vld [vmem:[%s1162_s5 + $0x4] sm:$0xf] (%p48_p0) }
  0x7d   : > { %v58_v24 = vpop.xlane.xlu0 %57 }
  0x7e   : > { %v66_v25 = vmul.f32 %v65_v23, %v58_v24  ;;  %v914_v24 = vld [vmem:[%s1162_s5 + $0x8] sm:$0xf0] (%p48_p0) }
  0x80   : > { %v67_v26 = vsub.f32 %v54_v15, %v66_v25  ;;  %v919_v25 = vld [vmem:[%s1162_s5 + $0x4] sm:$0xf0] (%p48_p0) }
  0x82   : > { %v68_v27 = vmul.f32 %v67_v26, %v67_v26 }
  0x84   : > { %v69_v28 = vsel %vm55_vm0, %v68_v27, 0.0  ;;  %v1004_v27 = vld [vmem:[%s1164_s7 + $0x4] sm:$0xf0] (%p48_p0) }
  0x85   : > { %70 = vadd.xlane.f32.xlu0 %v69_v28  ;;  %v1009_v28 = vld [vmem:[%s1164_s7 + $0x14] sm:$0xf] (%p48_p0) }
  0xf8   : > { %v71_v35 = vpop.xlane.xlu0 %70 }
  0xf9   : > { %v72_v36 = vmul.f32 %v71_v35, %v65_v23  ;;  %v909_v23 = vld [vmem:[%s1162_s5] sm:$0xf] (%p48_p0)  ;;  %v1044_v35 = vld [vmem:[%s1164_s7 + $0x24] sm:$0xf0] (%p48_p0) }
  0xfb   : > { %v73_v37 = vadd.f32 1e-05, %v72_v36  ;;  %v1049_v36 = vld [vmem:[%s1164_s7 + $0x34] sm:$0xf] (%p48_p0) }
  0xfd   : > { %681 = vrsqrt.f32 %v73_v37  ;;  %vm80_vm3 = vweird.f32 %v73_v37 }
 0x103   : > { %v682_v38 = vpop.eup %681 }
 0x104   : > { %v75_v39 = vmul.f32 %v682_v38, %v73_v37  ;;  %vm81_vm2 = vweird.f32 %v682_v38  ;;  %v1054_v37 = vld [vmem:[%s1164_s7 + $0x30] sm:$0xf] (%p48_p0) }
 0x105   : > { %vm82_vm4 = vmor %vm80_vm3, %vm81_vm2 }
 0x106   : > { %v76_v40 = vmul.f32 %v682_v38, %v75_v39  ;;  %v1064_v39 = vld [vmem:[%s1164_s7 + $0x34] sm:$0xf0] (%p48_p0) }
 0x108   : > { %v77_v41 = vmul.f32 0.5, %v76_v40  ;;  %v1069_v40 = vld [vmem:[%s1165_s8] sm:$0x3] (%p48_p0) }
 0x10a   : > { %v78_v42 = vsub.f32 1.5, %v77_v41  ;;  %v1071_v41 = vmov (%p48_p0), 0.0  }
 0x10c   : > { %v79_v43 = vmul.f32 %v682_v38, %v78_v42  ;;  %v1073_v42 = vmov (%p48_p0), 0.0  }
 0x10e   : > { %v83_v45 = vsel %vm82_vm4, %v682_v38, %v79_v43  ;;  %v1059_v38 = vld [vmem:[%s1164_s7 + $0x38] sm:$0xf0] (%p48_p0) }
 0x10f   : > { %v84_v46 = vmul.f32 %v83_v45, %v67_v26  ;;  %v999_v26 = vld [vmem:[%s1164_s7 + $0x8] sm:$0xf0] (%p48_p0) }
 0x111   : > { %v88_v48 = vmul.f32 %v86_v44, %v84_v46 }
 0x113   : > { %v92_v49 = vadd.f32 %v90_v47, %v88_v48 }
 0x115   : > { %v93_v50 = vpack.c.bf16 %v92_v49, %v92_v49 }
 0x117   : > { %539 = vmatmul.msk.bf16.vlgmr.msra.gmra.mxu0 %vm133_vm5, %v93_v50  ;;  %540 = vmatmul.msk.bf16.vlgmr.msra.gmra.mxu1 %vm133_vm5, %v93_v50 }
 0x118   : > { %541 = vmatmul.msk.bf16.vlgmr.msra.gmra.mxu2 %vm133_vm5, %v93_v50 }
 0x194   : > { %v146_v53 = vpop.f32.mrf.mxu0  ;;  %v159_v54 = vpop.f32.mrf.mxu1 }
 0x195   : > { %v160_v55 = vadd.f32 %v159_v54, %v96_v51  ;;  %v147_v56 = vadd.f32 %v146_v53, %v95_v52 }
 0x197   : > { %v178_v57 = vrot.slane %v160_v55, 6 }
 0x199   : > { %v180_v60 = vsel %vm179_vm6, %v147_v56, %v178_v57 }
 0x19a   : > { %186 = vst.msk [vmem:[%s183_s2] sm:$0xf] %vm888_vm8, %v180_v60 }
 0x19b   : > { %v172_v61 = vpop.f32.mrf.mxu2 }
 0x19c   : > { %v173_v62 = vadd.f32 %v172_v61, %v97_v59  ;;  %v148_v63 = vpop.f32.mrf.mxu0  ;;  %v161_v15 = vpop.f32.mrf.mxu1 }
 0x19e   : > { %v188_v16 = vrot.slane %v173_v62, 6 }
 0x1a0   : > { %v189_v17 = vsel %vm179_vm6, %v160_v55, %v188_v16 }
 0x1a1   : > { %190 = vrot.lane.b32.xlu1 %v189_v17, %s728_s24 }
 0x1a3   : > { %v174_v18 = vpop.f32.mrf.mxu2 }
 0x213   : > { %v191_v19 = vpop.permute.xlu1 %190  ;;  %50 = sbr.rel (!%p48_p0) target bundleno = 6 (0x6), region = 85 }
 0x214   : > { %v192_v20 = vrot.slane %v191_v19, 2 }
 0x216   : > { %v194_v21 = vsel %vm193_vm9, %v191_v19, %v192_v20 }
 0x217   : > { %198 = vst.msk [vmem:[%s197_s25] sm:$0xf] %vm888_vm8, %v194_v21 }
 0x218 LB: > { %v573_v43 = vor.u32 %v979_v11, %v969_v9  ;;  %v577_v44 = vor.u32 %v964_v8, %v974_v10  ;;  %v229_v45 = vpack.c.bf16 %v721_v42, %v721_v42  ;;  %v565_v46 = vor.u32 %v959_v7, %v949_v5  ;;  %s729_s7 = smov 64   ;;  %s642_s8 = sshll.u32 %s725_s20, 2  ;;  %s725_s20 = sphi %s1075_s20, %s222_s20   ;;  %v721_v42 = vphi %v1073_v42, %v341_v42   ;;  %v717_v41 = vphi %v1071_v41, %v467_v41  }
 0x219   : > { %v569_v47 = vor.u32 %v944_v4, %v954_v6  ;;  %v610_v48 = vor.u32 %v1064_v39, %v1054_v37  ;;  %v614_v49 = vor.u32 %v1049_v36, %v1059_v38  ;;  %v602_v50 = vor.u32 %v1044_v35, %v1034_v33  ;;  %s227_s6 = scalar_lea.vmem [#allocation2], %s642_s8  ;;  %s351_s21 = ssub.s32 7, %s725_s20 }
 0x21a   : > { %286 = vmatpush.bf16.msra.mxu0 %v573_v43  ;;  %299 = vmatpush.bf16.msra.mxu1 %v577_v44  ;;  %v606_v51 = vor.u32 %v1029_v32, %v1039_v34  ;;  %v557_v52 = vor.u32 %v939_v3, %v929_v1  ;;  %v561_v53 = vor.u32 %v924_v0, %v934_v2  ;;  %v231_v63 = vperm.slane %v984_v12, 0  ;;  %v228_v15 = vld [vmem:[%s227_s6] sm:$0xf]  ;;  %s643_s22 = sshll.u32 %s351_s21, 2  ;;  %s544_s23 = sshll.u32 %s725_s20, 1 }
 0x21b   : > { %236 = vrot.lane.b32.xlu0 %v229_v45, %s729_s7  ;;  %412 = vmatpush.bf16.msra.mxu2 %v610_v48  ;;  %v356_v54 = vpack.c.bf16 %v717_v41, %v717_v41  ;;  %v549_v55 = vor.u32 %v919_v25, %v909_v23  ;;  %v553_v56 = vor.u32 %v904_v22, %v914_v24  ;;  %v358_v44 = vperm.slane %v1069_v40, 0  ;;  %s354_s1 = scalar_lea.vmem [#allocation3], %s643_s22  ;;  %s348_s2 = scalar_lea.vmem %s1166_s9, %s544_s23 }
 0x21c   : > { %425 = vmatpush.bf16.msra.mxu3 %v614_v49  ;;  %v594_v57 = vor.u32 %v1024_v31, %v1014_v29  ;;  %v598_v58 = vor.u32 %v1009_v28, %v1019_v30  ;;  %v586_v59 = vor.u32 %v1004_v27, %v994_v14  ;;  %v590_v60 = vor.u32 %v989_v13, %v999_v26  ;;  %s581_s24 = sshll.u32 %s351_s21, 1  ;;  %s222_s20 = sadd.s32 1, %s725_s20  }
 0x21d   : > { %vm349_vm2 = vcmask 517120   ;;  %s474_s27 = scalar_lea.vmem %s1167_s10, %s581_s24  ;;  %p219_p1 = scmp.ge.s32.totalorder %s222_s20, 8  }
 0x21e   : > { %287 = vmatpush.bf16.msra.mxu0 %v565_v46  ;;  %300 = vmatpush.bf16.msra.mxu1 %v569_v47  ;;  %v355_v47 = vld [vmem:[%s354_s1] sm:$0xf] }
 0x21f   : > { %413 = vmatpush.bf16.msra.mxu2 %v602_v50 }
 0x220   : > { %426 = vmatpush.bf16.msra.mxu3 %v606_v51 }
 0x222   : > { %288 = vmatpush.bf16.msra.mxu0 %v557_v52  ;;  %301 = vmatpush.bf16.msra.mxu1 %v561_v53 }
 0x223   : > { %363 = vrot.lane.b32.xlu0 %v356_v54, %s729_s7  ;;  %414 = vmatpush.bf16.msra.mxu2 %v594_v57 }
 0x224   : > { %427 = vmatpush.bf16.msra.mxu3 %v598_v58 }
 0x226   : > { %289 = vmatpush.bf16.msra.mxu0 %v549_v55  ;;  %302 = vmatpush.bf16.msra.mxu1 %v553_v56 }
 0x227   : > { %415 = vmatpush.bf16.msra.mxu2 %v586_v59 }
 0x228   : > { %428 = vmatpush.bf16.msra.mxu3 %v590_v60  ;;  %v232_v60 = vperm.slane %v984_v12, 1 }
 0x28d   : > { %v237_v61 = vpop.permute.xlu0 %236 }
 0x28e   : > { %578 = vmatmul.msk.bf16.vlgmr.msra.gmra.mxu0 %vm193_vm9, %v237_v61  ;;  %579 = vmatmul.msk.bf16.vlgmr.msra.gmra.mxu1 %vm193_vm9, %v237_v61 }
 0x295   : > { %v364_v62 = vpop.permute.xlu0 %363 }
 0x296   : > { %615 = vmatmul.msk.bf16.vlgmr.msra.gmra.mxu2 %vm193_vm9, %v364_v62  ;;  %616 = vmatmul.msk.bf16.vlgmr.msra.gmra.mxu3 %vm193_vm9, %v364_v62 }
 0x30b   : > { %v291_v16 = vpop.f32.mrf.mxu0  ;;  %v304_v17 = vpop.f32.mrf.mxu1 }
 0x30c   : > { %v292_v18 = vadd.f32 %v291_v16, %v231_v63 }
 0x30e   : > { %v308_v19 = vadd.f32 %v292_v18, %v228_v15 }
 0x310   : > { %v580_v20 = vmul.f32 -1.442695, %v308_v19  ;;  %v330_v19 = vrot.slane %v228_v15, 2 }
 0x312   : > { %683 = vpow2.f32 %v580_v20  ;;  %v305_v20 = vadd.f32 %v304_v17, %v232_v60  ;;  %v456_v17 = vrot.slane %v355_v47, 2 }
 0x313   : > { %v293_v21 = vpop.f32.mrf.mxu0  ;;  %v306_v43 = vpop.f32.mrf.mxu1 }
 0x318   : > { %v684_v45 = vpop.eup %683 }
 0x319   : > { %v312_v46 = vadd.f32 1.0, %v684_v45  ;;  %v417_v48 = vpop.f32.mrf.mxu2  ;;  %v430_v49 = vpop.f32.mrf.mxu3 }
 0x31a   : > { %v418_v50 = vadd.f32 %v417_v48, %v358_v44 }
 0x31b   : > { %685 = vrcp.f32 %v312_v46  ;;  %v324_v58 = vand.u32 2147483648, %v312_v46  ;;  %v322_v62 = vand.u32 2147483647, %v312_v46  ;;  %vm318_vm11 = vweird.f32 %v312_v46 }
 0x31c   : > { %v434_v51 = vadd.f32 %v418_v50, %v355_v47 }
 0x31d   : > { %v325_v18 = vor.u32 1.1754944e-38, %v324_v58  ;;  %vm323_vm13 = vcmp.eq.f32.partialorder %v322_v62, 8.507059e+37 }
 0x31e   : > { %v617_v52 = vmul.f32 -1.442695, %v434_v51 }
 0x320   : > { %687 = vpow2.f32 %v617_v52 }
 0x321   : > { %v686_v53 = vpop.eup %685  ;;  %v419_v54 = vpop.f32.mrf.mxu2 }
 0x322   : > { %v432_v55 = vpop.f32.mrf.mxu3  ;;  %v314_v56 = vmul.f32 %v686_v53, %v312_v46  ;;  %vm319_vm10 = vweird.f32 %v686_v53  ;;  %v359_v54 = vperm.slane %v1069_v40, 1 }
 0x323   : > { %vm320_vm12 = vmor %vm318_vm11, %vm319_vm10 }
 0x324   : > { %v315_v57 = vsub.f32 1.0, %v314_v56 }
 0x326   : > { %v688_v59 = vpop.eup %687  ;;  %v316_v61 = vmul.f32 %v686_v53, %v315_v57 }
 0x327   : > { %v438_v63 = vadd.f32 1.0, %v688_v59 }
 0x328   : > { %v317_v16 = vadd.f32 %v686_v53, %v316_v61 }
 0x329   : > { %689 = vrcp.f32 %v438_v63  ;;  %v450_v52 = vand.u32 2147483648, %v438_v63  ;;  %v448_v46 = vand.u32 2147483647, %v438_v63  ;;  %vm444_vm15 = vweird.f32 %v438_v63 }
 0x32a   : > { %v321_v21 = vsel %vm320_vm12, %v686_v53, %v317_v16  ;;  %v431_v53 = vadd.f32 %v430_v49, %v359_v54 }
 0x32b   : > { %v326_v43 = vsel %vm323_vm13, %v325_v18, %v321_v21  ;;  %v451_v15 = vor.u32 1.1754944e-38, %v450_v52  ;;  %vm449_vm1 = vcmp.eq.f32.partialorder %v448_v46, 8.507059e+37 }
 0x32c   : > { %v328_v44 = vmul.f32 %v326_v43, %v305_v20  ;;  %v334_v16 = vsub.f32 1.0, %v326_v43 }
 0x32e   : > { %v332_v45 = vadd.f32 %v330_v19, %v328_v44 }
 0x32f   : > { %v690_v48 = vpop.eup %689 }
 0x330   : > { %691 = vtanh.f32 %v332_v45  ;;  %v440_v50 = vmul.f32 %v690_v48, %v438_v63  ;;  %vm445_vm14 = vweird.f32 %v690_v48  ;;  %v340_v63 = vmul.f32 %v721_v42, %v326_v43 }
 0x331   : > { %vm446_vm0 = vmor %vm444_vm15, %vm445_vm14 }
 0x332   : > { %v441_v51 = vsub.f32 1.0, %v440_v50 }
 0x334   : > { %v442_v55 = vmul.f32 %v690_v48, %v441_v51 }
 0x336   : > { %v692_v56 = vpop.eup %691  ;;  %v443_v57 = vadd.f32 %v690_v48, %v442_v55 }
 0x337   : > { %336 = vrot.lane.b32.xlu1 %v692_v56, %s729_s7 }
 0x338   : > { %v447_v58 = vsel %vm446_vm0, %v690_v48, %v443_v57 }
 0x339   : > { %v452_v59 = vsel %vm449_vm1, %v451_v15, %v447_v58 }
 0x33a   : > { %v454_v60 = vmul.f32 %v452_v59, %v431_v53  ;;  %v460_v49 = vsub.f32 1.0, %v452_v59  ;;  %v466_v21 = vmul.f32 %v717_v41, %v452_v59 }
 0x33c   : > { %v458_v61 = vadd.f32 %v456_v17, %v454_v60 }
 0x33e   : > { %693 = vtanh.f32 %v458_v61 }
 0x344   : > { %v694_v62 = vpop.eup %693 }
 0x345   : > { %462 = vrot.lane.b32.xlu1 %v694_v62, %s729_s7 }
 0x3a9   : > { %v337_v18 = vpop.permute.xlu1 %336 }
 0x3aa   : > { %v339_v19 = vmul.f32 %v337_v18, %v334_v16 }
 0x3ac   : > { %v341_v42 = vadd.f32 %v340_v63, %v339_v19  }
 0x3ae   : > { %343 = vst [vmem:[#allocation1] ss:$4 sm:$0xff] %v341_v42 }
 0x3b5   : > { %v344_v47 = vld.sshfl [vmem:[#allocation1] sm:$0xff pattern:$0x73625140] }
 0x3b6   : > { %345 = vrot.lane.b32.xlu2 %v344_v47, %s729_s7 }
 0x3b7   : > { %v463_v20 = vpop.permute.xlu1 %462 }
 0x3b8   : > { %v465_v44 = vmul.f32 %v463_v20, %v460_v49 }
 0x3ba   : > { %v467_v41 = vadd.f32 %v466_v21, %v465_v44  }
 0x3bc   : > { %469 = vst [vmem:[#allocation1] ss:$4 sm:$0xff] %v467_v41 }
 0x3c3   : > { %v470_v45 = vld.sshfl [vmem:[#allocation1] sm:$0xff pattern:$0x73625140] }
 0x3c4   : > { %471 = vrot.lane.b32.xlu2 %v470_v45, %s729_s7 }
 0x410   : > { %v346_v43 = vpop.permute.xlu2 %345 }
 0x411   : > { %350 = vst.msk [vmem:[%s348_s2] sm:$0x3] %vm349_vm2, %v346_v43 }
 0x41b   :  { %221 = sbr.rel (!%p219_p1) target bundleno = 536 (0x218), region = 96 }
 0x41e   : > { %v472_v48 = vpop.permute.xlu2 %471 }
 0x41f   : > { %475 = vst.msk [vmem:[%s474_s27] sm:$0x3] %vm349_vm2, %v472_v48 }

// kernel: transformer_block.9
= control target key start
LH: loop header
LB: loop body
LE: loop exit
PB: predicated region body
PF: predicated region fallthrough
CT: control target
= control target key end

     0   :  { %s432_s0 = inlined_call_operand.vmem [shape: f32[16,64], index: 0, kind: input, shape index: {}]   ;;  %s433_s1 = inlined_call_operand.vmem [shape: f32[16,64], index: 1, kind: input, shape index: {}]   ;;  %s434_s2 = inlined_call_operand.vmem [shape: f32[16,32], index: 2, kind: input, shape index: {}]   ;;  %s435_s3 = inlined_call_operand.vmem [shape: bf16[64,32], index: 3, kind: input, shape index: {}]   ;;  %s436_s4 = inlined_call_operand.vmem [shape: bf16[64,32], index: 4, kind: input, shape index: {}]   ;;  %s437_s5 = inlined_call_operand.vmem [shape: f32[1,32], index: 5, kind: input, shape index: {}]   ;;  %s438_s6 = inlined_call_operand.vmem [shape: f32[1,32], index: 6, kind: input, shape index: {}]   ;;  %s439_s7 = inlined_call_operand.vmem [shape: f32[1,32], index: 7, kind: input, shape index: {}]   ;;  %s440_s8 = inlined_call_operand.hbm [shape: f32[16,32], index: 8, kind: output, shape index: {}]  }
   0x1   :  { %v283_v0 = vld [vmem:[%s436_s4 + $0x18] sm:$0xff]  ;;  %v282_v2 = vld [vmem:[%s436_s4 + $0x10] sm:$0xff]  ;;  %v33_v4 = vld [vmem:[%s433_s1] sm:$0xff] }
   0x2   :  { %v279_v1 = vld [vmem:[%s435_s3 + $0x18] sm:$0xff]  ;;  %97 = vmatpush.bf16.msra.mxu0 %v283_v0  ;;  %v278_v3 = vld [vmem:[%s435_s3 + $0x10] sm:$0xff]  ;;  %v34_v5 = vld [vmem:[%s433_s1 + $0x8] sm:$0xff]  ;;  %vm41_vm0 = vcmp.ge.f32.partialorder %v33_v4, 0.0  ;;  %v43_v10 = vmul.f32 0.01, %v33_v4 }
   0x3   :  { %138 = vmatpush.bf16.msra.mxu1 %v279_v1  ;;  %v31_v6 = vld [vmem:[%s432_s0] sm:$0xff]  ;;  %v32_v7 = vld [vmem:[%s432_s0 + $0x8] sm:$0xff]  ;;  %v44_v11 = vmul.f32 0.01, %v34_v5 }
   0x4   :  { %v281_v8 = vld [vmem:[%s436_s4 + $0x8] sm:$0xff]  ;;  %v37_v12 = vmul.f32 0.01, %v31_v6  ;;  %v38_v13 = vmul.f32 0.01, %v32_v7 }
   0x5   :  { %v277_v9 = vld [vmem:[%s435_s3 + $0x8] sm:$0xff] }
   0x6   :  { %98 = vmatpush.bf16.msra.mxu0 %v282_v2 }
   0x7   :  { %139 = vmatpush.bf16.msra.mxu1 %v278_v3 }
   0x8   :  { %13 = vsyncpa [#allocation3], 0  ;;  %vm42_vm1 = vcmp.ge.f32.partialorder %v34_v5, 0.0  ;;  %vm35_vm2 = vcmp.ge.f32.partialorder %v31_v6, 0.0  ;;  %vm36_vm3 = vcmp.ge.f32.partialorder %v32_v7, 0.0  ;;  %v45_v14 = vsel %vm41_vm0, %v33_v4, %v43_v10  ;;  %v280_v15 = vld [vmem:[%s436_s4] sm:$0xff] }
   0x9   :  { %v276_v16 = vld [vmem:[%s435_s3] sm:$0xff]  ;;  %v46_v17 = vsel %vm42_vm1, %v34_v5, %v44_v11  ;;  %v39_v18 = vsel %vm35_vm2, %v31_v6, %v37_v12  ;;  %v40_v19 = vsel %vm36_vm3, %v32_v7, %v38_v13  ;;  %vm89_vm4 = vcmask 523264   ;;  %v155_v33 = vld [vmem:[%s434_s2 + $0x8] sm:$0xff]  ;;  %s230_s14 = sshll.u32 %s440_s8, 4  ;;  %s326_s15 = smov 8   ;;  %s231_s14 = int_to_ptr.hbm [resolvable:$true] %s230_s14 }
   0xa   :  { %99 = vmatpush.bf16.msra.mxu0 %v281_v8  ;;  %v56_v20 = vpack.c.bf16 %v46_v17, %v45_v14  ;;  %v47_v21 = vpack.c.bf16 %v40_v19, %v39_v18  ;;  %v288_v22 = vld [vmem:[%s437_s5] ss:$0 sm:$0xff]  ;;  %vm160_vm5 = vcmask 261120   ;;  %v323_v37 = vmov 32.0  }
   0xb   :  { %140 = vmatpush.bf16.msra.mxu1 %v277_v9  ;;  %v154_v26 = vld [vmem:[%s434_s2] sm:$0xff]  ;;  %291 = vrcp.f32 %v323_v37 }
   0xc   :  { %v289_v4 = vld [vmem:[%s438_s6] ss:$0 sm:$0xff]  ;;  %s324_s6 = smov [#allocation2]  }
   0xd   :  { %v290_v8 = vld [vmem:[%s439_s7] ss:$0 sm:$0xff]  ;;  %s228_s11 = sshll.u32 %s324_s6, 4  ;;  %s325_s7 = smov 128   ;;  %s229_s11 = int_to_ptr.vmem [resolvable:$true] %s228_s11 }
   0xe   :  { %100 = vmatpush.bf16.msra.mxu0 %v280_v15 }
   0xf   :  { %141 = vmatpush.bf16.msra.mxu1 %v276_v16 }
  0x11   :  { %258 = vmatmul.msk.bf16.vlgmr.msra.gmra.mxu0 %vm89_vm4, %v56_v20  ;;  %v292_v38 = vpop.eup %291 }
  0x12   :  { %275 = vmatmul.msk.bf16.vlgmr.msra.gmra.mxu1 %vm89_vm4, %v47_v21  ;;  %v168_v39 = vmul.f32 32.0, %v292_v38  ;;  %vm172_vm6 = vweird.f32 %v292_v38 }
  0x14   :  { %v169_v40 = vsub.f32 1.0, %v168_v39 }
  0x16   :  { %v170_v41 = vmul.f32 %v292_v38, %v169_v40 }
  0x18   :  { %v171_v42 = vadd.f32 %v292_v38, %v170_v41 }
  0x1a   :  { %v173_v43 = vsel %vm172_vm6, %v292_v38, %v171_v42 }
  0x8e   :  { %v102_v23 = vpop.f32.mrf.mxu0 }
  0x8f   :  { %v143_v24 = vpop.f32.mrf.mxu1 }
  0x90   :  { %v144_v25 = vadd.f32 %v143_v24, %v102_v23 }
  0x92   :  { %v152_v27 = vadd.f32 %v288_v22, %v144_v25 }
  0x94   :  { %v156_v28 = vadd.f32 %v154_v26, %v152_v27 }
  0x96   :  { %v161_v29 = vsel %vm160_vm5, %v156_v28, 0.0  ;;  %v104_v30 = vpop.f32.mrf.mxu0 }
  0x97   :  { %v145_v31 = vpop.f32.mrf.mxu1  ;;  %162 = vadd.xlane.f32.xlu0 %v161_v29 }
  0x98   :  { %v146_v32 = vadd.f32 %v145_v31, %v104_v30 }
  0x9a   :  { %v153_v34 = vadd.f32 %v288_v22, %v146_v32 }
  0x9c   :  { %v157_v35 = vadd.f32 %v155_v33, %v153_v34 }
  0x9e   :  { %v164_v36 = vsel %vm160_vm5, %v157_v35, 0.0 }
  0x9f   :  { %165 = vadd.xlane.f32.xlu0 %v164_v36 }
 0x10a   :  { %v163_v44 = vpop.xlane.xlu0 %162 }
 0x10b   :  { %v174_v45 = vmul.f32 %v173_v43, %v163_v44 }
 0x10d   :  { %v176_v46 = vsub.f32 %v156_v28, %v174_v45 }
 0x10f   :  { %v178_v47 = vmul.f32 %v176_v46, %v176_v46 }
 0x111   :  { %v180_v48 = vsel %vm160_vm5, %v178_v47, 0.0 }
 0x112   :  { %181 = vadd.xlane.f32.xlu1 %v180_v48  ;;  %v166_v49 = vpop.xlane.xlu0 %165 }
 0x113   :  { %v175_v50 = vmul.f32 %v173_v43, %v166_v49 }
 0x115   :  { %v177_v51 = vsub.f32 %v157_v35, %v175_v50 }
 0x117   :  { %v179_v52 = vmul.f32 %v177_v51, %v177_v51 }
 0x119   :  { %v183_v53 = vsel %vm160_vm5, %v179_v52, 0.0 }
 0x11a   :  { %184 = vadd.xlane.f32.xlu1 %v183_v53 }
 0x185   :  { %v182_v54 = vpop.xlane.xlu1 %181 }
 0x186   :  { %v186_v55 = vmul.f32 %v182_v54, %v173_v43 }
 0x188   :  { %v188_v56 = vadd.f32 1e-05, %v186_v55 }
 0x18a   :  { %293 = vrsqrt.f32 %v188_v56  ;;  %vm196_vm8 = vweird.f32 %v188_v56 }
 0x18d   :  { %v185_v57 = vpop.xlane.xlu1 %184 }
 0x18e   :  { %v187_v58 = vmul.f32 %v185_v57, %v173_v43 }
 0x190   :  { %v294_v59 = vpop.eup %293  ;;  %v189_v60 = vadd.f32 1e-05, %v187_v58 }
 0x191   :  { %v191_v61 = vmul.f32 %v294_v59, %v188_v56  ;;  %vm197_vm7 = vweird.f32 %v294_v59 }
 0x192   :  { %295 = vrsqrt.f32 %v189_v60  ;;  %vm198_vm9 = vmor %vm196_vm8, %vm197_vm7  ;;  %vm206_vm11 = vweird.f32 %v189_v60 }
 0x193   :  { %v192_v62 = vmul.f32 %v294_v59, %v191_v61 }
 0x195   :  { %v193_v63 = vmul.f32 0.5, %v192_v62 }
 0x197   :  { %v194_v0 = vsub.f32 1.5, %v193_v63 }
 0x198   :  { %v296_v1 = vpop.eup %295 }
 0x199   :  { %v195_v2 = vmul.f32 %v294_v59, %v194_v0  ;;  %v201_v3 = vmul.f32 %v296_v1, %v189_v60  ;;  %vm207_vm10 = vweird.f32 %v296_v1 }
 0x19a   :  { %vm208_vm12 = vmor %vm206_vm11, %vm207_vm10 }
 0x19b   :  { %v199_v5 = vsel %vm198_vm9, %v294_v59, %v195_v2  ;;  %v202_v6 = vmul.f32 %v296_v1, %v201_v3 }
 0x19c   :  { %v210_v7 = vmul.f32 %v199_v5, %v176_v46 }
 0x19d   :  { %v203_v9 = vmul.f32 0.5, %v202_v6 }
 0x19e   :  { %v215_v10 = vmul.f32 %v289_v4, %v210_v7 }
 0x19f   :  { %v204_v11 = vsub.f32 1.5, %v203_v9 }
 0x1a0   :  { %v220_v12 = vadd.f32 %v290_v8, %v215_v10 }
 0x1a1   :  { %v205_v13 = vmul.f32 %v296_v1, %v204_v11 }
 0x1a2   :  { %222 = vst.msk [vmem:[#allocation2] sm:$0xff] %vm160_vm5, %v220_v12 }
 0x1a3   :  { %v209_v14 = vsel %vm208_vm12, %v296_v1, %v205_v13 }
 0x1a4   :  { %v211_v15 = vmul.f32 %v209_v14, %v177_v51 }
 0x1a6   :  { %v216_v16 = vmul.f32 %v289_v4, %v211_v15 }
 0x1a8   :  { %v221_v17 = vadd.f32 %v290_v8, %v216_v16 }
 0x1aa   :  { %223 = vst.msk [vmem:[#allocation2 + $0x8] sm:$0xff] %vm160_vm5, %v221_v17 }
 0x1ab   :  { %236 = dma.vmem_to_hbm [thread:$0]  %s229_s11, 256, %s231_s14, [#allocation3], %s325_s7, %s325_s7, %s326_s15  }
 0x1ac   :  { %321 = dma.done.wait [#allocation3], 256  }
 0x1ad   :  { %322 = vsyncadd [#allocation3], 4294967040 }
 0x1ae   :  { %241 = vsyncpa [#allocation3], 1 }

</bundles_post_ra>
